<compile_context>
chip_gen: v7x
topology: tpu7x:2x2x1
jax: 0.10.0
libtpu: 0.0.40
codegen_flags: <defaults>
</compile_context>

<pallas_src>
import functools
import math

import jax
import jax.numpy as jnp
from jax.experimental import pallas as pl

# ---------------------------------------------------------------------------
# Model hyper-parameters (consistent with the module's __init__ args).
# ---------------------------------------------------------------------------
EMBED_DIM = 32
NUM_HEADS = 4
FORWARD_EXPANSION = 4          # dim_feedforward = 4 * 32 = 128
NUM_LAYERS = 2
DROPOUT = 0.1                  # identity at inference
SEQ_LEN = 8                    # multiple of 8 (sublane tile)
BATCH = 2
LN_EPS = 1e-5

_LANES = 128
_ROWS_PER_LAYER = 8            # slab rows per layer: bqkv,b1,bo,b2,g1,be1,g2,be2


# ---------------------------------------------------------------------------
# In-kernel helper
# ---------------------------------------------------------------------------
def _layernorm(x, gamma, beta):
    # x: (M, E); gamma/beta: (1, E)   (torch.nn.LayerNorm, biased variance)
    mu = jnp.mean(x, axis=-1, keepdims=True)
    var = jnp.mean(jnp.square(x - mu), axis=-1, keepdims=True)
    return (x - mu) * jax.lax.rsqrt(var + LN_EPS) * gamma + beta


# ---------------------------------------------------------------------------
# Fused kernel: PE add + NUM_LAYERS encoder layers + final LayerNorm
# ---------------------------------------------------------------------------
def fused_transformer_kernel(x_ref, pe_ref, wqkv_ref, wo_ref, w1_ref, w2_ref,
                             slab_ref, o_ref, *, num_heads, seq_len):
    M, E = x_ref.shape
    L = wqkv_ref.shape[0]
    F = w1_ref.shape[-1]
    H = num_heads
    S = seq_len
    B = M // S
    Dh = E // H
    scale = 1.0 / math.sqrt(Dh)
    bf16 = jnp.bfloat16

    # Positional encoding add: pe is pre-tiled to (M, E) -> plain 2-vreg add.
    x = x_ref[...] + pe_ref[...]                              # (M, E) f32

    for l in range(L):                                        # L is tiny: unroll
        base = l * _ROWS_PER_LAYER
        bqkv = slab_ref[base + 0:base + 1, :3 * E]            # (1, 3E)
        b1   = slab_ref[base + 1:base + 2, :F]                # (1, F)
        bo   = slab_ref[base + 2:base + 3, :E]                # (1, E)
        b2   = slab_ref[base + 3:base + 4, :E]
        g1   = slab_ref[base + 4:base + 5, :E]
        be1  = slab_ref[base + 5:base + 6, :E]
        g2   = slab_ref[base + 6:base + 7, :E]
        be2  = slab_ref[base + 7:base + 8, :E]

        # ---- self-attention -------------------------------------------------
        # One dense (M,E)@(E,3E) projection for Q, K, V (bf16 operands, f32 acc).
        qkv = jnp.dot(x.astype(bf16), wqkv_ref[l],
                      preferred_element_type=jnp.float32) + bqkv   # (M, 3E) f32

        q3 = (qkv[:, 0:E] * scale).reshape(B, S, E)
        k3 = qkv[:, E:2 * E].reshape(B, S, E)
        v3 = qkv[:, 2 * E:3 * E].reshape(B, S, E)

        ctx_parts = []
        for h in range(H):                                    # static unroll
            sl = slice(h * Dh, (h + 1) * Dh)                  # static lane slice
            qh = q3[:, :, sl].astype(bf16)
            kh = k3[:, :, sl].astype(bf16)
            vh = v3[:, :, sl].astype(bf16)
            s = jnp.einsum('bqd,bkd->bqk', qh, kh,
                           preferred_element_type=jnp.float32)     # (B, S, S)
            s = s - jnp.max(s, axis=-1, keepdims=True)
            p = jnp.exp(s)
            # denom >= 1 after max-subtraction -> approx reciprocal is enough.
            p = p * pl.reciprocal(jnp.sum(p, axis=-1, keepdims=True), approx=True)
            ctx_parts.append(jnp.einsum('bqk,bkd->bqd', p.astype(bf16), vh,
                                        preferred_element_type=jnp.float32))
        ctx = jnp.concatenate(ctx_parts, axis=-1).reshape(M, E)    # (M, E) f32

        # Dense output projection (head-sum folded into a single K=E matmul).
        attn = jnp.dot(ctx.astype(bf16), wo_ref[l],
                       preferred_element_type=jnp.float32) + bo    # (M, E)

        # residual + layernorm 1
        y = _layernorm(x + attn, g1, be1)

        # ---- feed-forward (relu) ---------------------------------------------
        hdn = jnp.dot(y.astype(bf16), w1_ref[l],
                      preferred_element_type=jnp.float32) + b1     # (M, F)
        hdn = jnp.maximum(hdn, 0.0)
        z = jnp.dot(hdn.astype(bf16), w2_ref[l],
                    preferred_element_type=jnp.float32) + b2       # (M, E)

        # residual + layernorm 2
        x = _layernorm(y + z, g2, be2)

    # final LayerNorm + single flat store (wrapper reshapes back to (B, S, E)).
    gn = slab_ref[L * _ROWS_PER_LAYER:L * _ROWS_PER_LAYER + 1, :E]
    bn = slab_ref[L * _ROWS_PER_LAYER + 1:L * _ROWS_PER_LAYER + 2, :E]
    o_ref[...] = _layernorm(x, gn, bn).astype(o_ref.dtype)


# ---------------------------------------------------------------------------
# Wrapper: one gridless pallas_call, everything VMEM-resident
# ---------------------------------------------------------------------------
def fourier_pe(seq_len, embed_dim, dtype=jnp.float32):
    # pe = cat([sin(pos*freqs), cos(pos*freqs)], -1)  -- matches the module
    freqs = jnp.power(10000.0,
                      -jnp.arange(0, embed_dim, 2, dtype=jnp.float32) / embed_dim)
    pos = jnp.arange(seq_len, dtype=jnp.float32)[:, None]
    sinusoid = pos * freqs[None, :]
    return jnp.concatenate([jnp.sin(sinusoid), jnp.cos(sinusoid)],
                           axis=-1).astype(dtype)


@functools.partial(jax.jit, static_argnames=("num_heads",))
def transformer_forward(x, packed, num_heads=NUM_HEADS):
    B, S, E = x.shape
    M = B * S
    x_flat = x.reshape(M, E)                                  # batch -> matmul rows
    pe_flat = jnp.tile(fourier_pe(S, E, x.dtype), (B, 1))     # (M, E), const-folded
    kernel = functools.partial(fused_transformer_kernel,
                               num_heads=num_heads, seq_len=S)
    out_flat = pl.pallas_call(
        kernel,
        out_shape=jax.ShapeDtypeStruct((M, E), x.dtype),
    )(x_flat, pe_flat, packed["wqkv"], packed["wo"],
      packed["w1"], packed["w2"], packed["slab"])
    return out_flat.reshape(B, S, E)


# ---------------------------------------------------------------------------
# Parameters in PyTorch layout + packing into the kernel layout
# ---------------------------------------------------------------------------
def init_torch_style_params(key, embed_dim, num_heads, forward_expansion,
                            num_layers):
    E = embed_dim
    F_ = forward_expansion * embed_dim
    scale = 0.05
    layers = []
    for l in range(num_layers):
        ks = jax.random.split(jax.random.fold_in(key, l), 8)
        layers.append(dict(
            in_proj_weight=jax.random.normal(ks[0], (3 * E, E), jnp.float32) * scale,
            in_proj_bias=jax.random.normal(ks[1], (3 * E,), jnp.float32) * scale,
            out_proj_weight=jax.random.normal(ks[2], (E, E), jnp.float32) * scale,
            out_proj_bias=jax.random.normal(ks[3], (E,), jnp.float32) * scale,
            linear1_weight=jax.random.normal(ks[4], (F_, E), jnp.float32) * scale,
            linear1_bias=jax.random.normal(ks[5], (F_,), jnp.float32) * scale,
            linear2_weight=jax.random.normal(ks[6], (E, F_), jnp.float32) * scale,
            linear2_bias=jax.random.normal(ks[7], (E,), jnp.float32) * scale,
            norm1_weight=jnp.ones((E,), jnp.float32),
            norm1_bias=jnp.zeros((E,), jnp.float32),
            norm2_weight=jnp.ones((E,), jnp.float32),
            norm2_bias=jnp.zeros((E,), jnp.float32),
        ))
    return dict(layers=layers,
                norm_weight=jnp.ones((E,), jnp.float32),
                norm_bias=jnp.zeros((E,), jnp.float32))


def pack_params(params):
    """PyTorch nn.TransformerEncoderLayer layout -> dense kernel layout.

    Weights -> bf16 stacked-by-layer dense matmul layouts; all biases/LN params
    -> one lane-dense f32 slab (one DMA instead of ~12 tiny padded ones).
    """
    E = params["layers"][0]["in_proj_weight"].shape[1]
    F_ = params["layers"][0]["linear1_weight"].shape[0]
    lanes = _LANES * ((max(3 * E, F_, _LANES) + _LANES - 1) // _LANES)

    def row(vec):
        v = jnp.asarray(vec, jnp.float32).reshape(-1)
        return jnp.pad(v, (0, lanes - v.shape[0]))

    wqkv, wo, w1, w2, rows = [], [], [], [], []
    for p in params["layers"]:
        wqkv.append(p["in_proj_weight"].T)        # (E, 3E)
        wo.append(p["out_proj_weight"].T)         # (E, E)
        w1.append(p["linear1_weight"].T)          # (E, F)
        w2.append(p["linear2_weight"].T)          # (F, E)
        rows += [row(p["in_proj_bias"]), row(p["linear1_bias"]),
                 row(p["out_proj_bias"]), row(p["linear2_bias"]),
                 row(p["norm1_weight"]), row(p["norm1_bias"]),
                 row(p["norm2_weight"]), row(p["norm2_bias"])]
    rows += [row(params["norm_weight"]), row(params["norm_bias"])]
    return dict(
        wqkv=jnp.stack(wqkv).astype(jnp.bfloat16),   # (L, E, 3E)
        wo=jnp.stack(wo).astype(jnp.bfloat16),       # (L, E, E)
        w1=jnp.stack(w1).astype(jnp.bfloat16),       # (L, E, F)
        w2=jnp.stack(w2).astype(jnp.bfloat16),       # (L, F, E)
        slab=jnp.stack(rows, axis=0),                # (L*8+2, 128) f32
    )


# ---------------------------------------------------------------------------
# Pure-JAX reference (mirrors PyTorch semantics) for a correctness check
# ---------------------------------------------------------------------------
def _ref_ln(x, g, b):
    mu = x.mean(-1, keepdims=True)
    var = ((x - mu) ** 2).mean(-1, keepdims=True)
    return (x - mu) / jnp.sqrt(var + LN_EPS) * g + b


def ref_forward(x, params, num_heads):
    B, S, E = x.shape
    H, Dh = num_heads, E // num_heads
    x = x + fourier_pe(S, E, x.dtype)[None]
    for p in params["layers"]:
        qkv = x @ p["in_proj_weight"].T + p["in_proj_bias"]
        q, k, v = qkv[..., :E], qkv[..., E:2 * E], qkv[..., 2 * E:]
        q = q.reshape(B, S, H, Dh).transpose(0, 2, 1, 3) / math.sqrt(Dh)
        k = k.reshape(B, S, H, Dh).transpose(0, 2, 1, 3)
        v = v.reshape(B, S, H, Dh).transpose(0, 2, 1, 3)
        attn = jax.nn.softmax(q @ k.transpose(0, 1, 3, 2), axis=-1)
        ctx = (attn @ v).transpose(0, 2, 1, 3).reshape(B, S, E)
        attn_out = ctx @ p["out_proj_weight"].T + p["out_proj_bias"]
        y = _ref_ln(x + attn_out, p["norm1_weight"], p["norm1_bias"])
        h = jax.nn.relu(y @ p["linear1_weight"].T + p["linear1_bias"])
        z = h @ p["linear2_weight"].T + p["linear2_bias"]
        x = _ref_ln(y + z, p["norm2_weight"], p["norm2_bias"])
    return _ref_ln(x, params["norm_weight"], params["norm_bias"])


# ---------------------------------------------------------------------------
if __name__ == "__main__":
    key = jax.random.PRNGKey(0)
    kx, kp = jax.random.split(key)
    x = jax.random.normal(kx, (BATCH, SEQ_LEN, EMBED_DIM), jnp.float32)
    params = init_torch_style_params(kp, EMBED_DIM, NUM_HEADS,
                                     FORWARD_EXPANSION, NUM_LAYERS)
    packed = pack_params(params)

    out = transformer_forward(x, packed)
    out = jax.block_until_ready(out)

    ref = ref_forward(x, params, NUM_HEADS)
    assert out.shape == (BATCH, SEQ_LEN, EMBED_DIM)
    max_err = float(jnp.max(jnp.abs(out - ref)))
    # bf16 MXU operands (f32 accumulation) + approx EUP reciprocal -> slightly
    # looser tolerance than a pure-f32 comparison.
    assert max_err < 3e-2, f"max abs err {max_err}"
    print("KERNEL_OK")
</pallas_src>

<mosaic_0001>
module attributes {stable_mosaic.version = 11 : i64} {
  func.func @fused_transformer_kernel(%arg0: memref<16x32xf32, #tpu.memory_space<vmem>>, %arg1: memref<16x32xf32, #tpu.memory_space<vmem>>, %arg2: memref<2x32x96xbf16, #tpu.memory_space<vmem>>, %arg3: memref<2x32x32xbf16, #tpu.memory_space<vmem>>, %arg4: memref<2x32x128xbf16, #tpu.memory_space<vmem>>, %arg5: memref<2x128x32xbf16, #tpu.memory_space<vmem>>, %arg6: memref<18x128xf32, #tpu.memory_space<vmem>>, %arg7: memref<16x32xf32, #tpu.memory_space<vmem>>) attributes {dimension_semantics = [], scalar_prefetch = 0 : i64, scratch_operands = 0 : i64, tpu.core_type = #tpu.core_type<tc>} {
    %c0 = arith.constant 0 : index
    %c0_0 = arith.constant 0 : index
    %0 = vector.load %arg0[%c0, %c0_0] : memref<16x32xf32, #tpu.memory_space<vmem>>, vector<16x32xf32>
    %c0_1 = arith.constant 0 : index
    %c0_2 = arith.constant 0 : index
    %1 = vector.load %arg1[%c0_1, %c0_2] : memref<16x32xf32, #tpu.memory_space<vmem>>, vector<16x32xf32>
    %2 = arith.addf %0, %1 : vector<16x32xf32>
    %c0_3 = arith.constant 0 : index
    %c0_4 = arith.constant 0 : index
    %3 = vector.load %arg6[%c0_3, %c0_4] : memref<18x128xf32, #tpu.memory_space<vmem>>, vector<1x96xf32>
    %c1 = arith.constant 1 : index
    %c0_5 = arith.constant 0 : index
    %4 = vector.load %arg6[%c1, %c0_5] : memref<18x128xf32, #tpu.memory_space<vmem>>, vector<1x128xf32>
    %c2 = arith.constant 2 : index
    %c0_6 = arith.constant 0 : index
    %5 = vector.load %arg6[%c2, %c0_6] : memref<18x128xf32, #tpu.memory_space<vmem>>, vector<1x32xf32>
    %c3 = arith.constant 3 : index
    %c0_7 = arith.constant 0 : index
    %6 = vector.load %arg6[%c3, %c0_7] : memref<18x128xf32, #tpu.memory_space<vmem>>, vector<1x32xf32>
    %c4 = arith.constant 4 : index
    %c0_8 = arith.constant 0 : index
    %7 = vector.load %arg6[%c4, %c0_8] : memref<18x128xf32, #tpu.memory_space<vmem>>, vector<1x32xf32>
    %c5 = arith.constant 5 : index
    %c0_9 = arith.constant 0 : index
    %8 = vector.load %arg6[%c5, %c0_9] : memref<18x128xf32, #tpu.memory_space<vmem>>, vector<1x32xf32>
    %c6 = arith.constant 6 : index
    %c0_10 = arith.constant 0 : index
    %9 = vector.load %arg6[%c6, %c0_10] : memref<18x128xf32, #tpu.memory_space<vmem>>, vector<1x32xf32>
    %c7 = arith.constant 7 : index
    %c0_11 = arith.constant 0 : index
    %10 = vector.load %arg6[%c7, %c0_11] : memref<18x128xf32, #tpu.memory_space<vmem>>, vector<1x32xf32>
    %11 = arith.truncf %2 : vector<16x32xf32> to vector<16x32xbf16>
    %c0_12 = arith.constant 0 : index
    %c0_13 = arith.constant 0 : index
    %c0_14 = arith.constant 0 : index
    %12 = vector.load %arg2[%c0_12, %c0_13, %c0_14] : memref<2x32x96xbf16, #tpu.memory_space<vmem>>, vector<1x32x96xbf16>
    %13 = vector.shape_cast %12 : vector<1x32x96xbf16> to vector<32x96xbf16>
    %cst = arith.constant dense<0.000000e+00> : vector<16x96xf32>
    %14 = tpu.matmul %11, %13, %cst {dimension_numbers = #tpu.dot_dimension_numbers<[1], [0], [0], [1], [0, 0, 1, 1], [], []>} : vector<16x32xbf16>, vector<32x96xbf16>, vector<16x96xf32> -> vector<16x96xf32>
    %15 = vector.broadcast %3 : vector<1x96xf32> to vector<16x96xf32>
    %16 = arith.addf %14, %15 : vector<16x96xf32>
    %17 = vector.extract_strided_slice %16 {offsets = [0, 0], sizes = [16, 32], strides = [1, 1]} : vector<16x96xf32> to vector<16x32xf32>
    %cst_15 = arith.constant 0.353553385 : f32
    %18 = vector.broadcast %cst_15 : f32 to vector<16x32xf32>
    %19 = arith.mulf %17, %18 : vector<16x32xf32>
    %20 = vector.shape_cast %19 : vector<16x32xf32> to vector<2x8x32xf32>
    %21 = vector.extract_strided_slice %16 {offsets = [0, 32], sizes = [16, 32], strides = [1, 1]} : vector<16x96xf32> to vector<16x32xf32>
    %22 = vector.shape_cast %21 : vector<16x32xf32> to vector<2x8x32xf32>
    %23 = vector.extract_strided_slice %16 {offsets = [0, 64], sizes = [16, 32], strides = [1, 1]} : vector<16x96xf32> to vector<16x32xf32>
    %24 = vector.shape_cast %23 : vector<16x32xf32> to vector<2x8x32xf32>
    %25 = vector.extract_strided_slice %20 {offsets = [0, 0, 0], sizes = [2, 8, 8], strides = [1, 1, 1]} : vector<2x8x32xf32> to vector<2x8x8xf32>
    %26 = arith.truncf %25 : vector<2x8x8xf32> to vector<2x8x8xbf16>
    %27 = vector.extract_strided_slice %22 {offsets = [0, 0, 0], sizes = [2, 8, 8], strides = [1, 1, 1]} : vector<2x8x32xf32> to vector<2x8x8xf32>
    %28 = arith.truncf %27 : vector<2x8x8xf32> to vector<2x8x8xbf16>
    %29 = vector.extract_strided_slice %24 {offsets = [0, 0, 0], sizes = [2, 8, 8], strides = [1, 1, 1]} : vector<2x8x32xf32> to vector<2x8x8xf32>
    %30 = arith.truncf %29 : vector<2x8x8xf32> to vector<2x8x8xbf16>
    "tpu.trace_start"() <{level = 10 : i32, message = "bqd,bkd->bqk"}> : () -> ()
    %cst_16 = arith.constant dense<0.000000e+00> : vector<2x8x8xf32>
    %31 = tpu.matmul %26, %28, %cst_16 {dimension_numbers = #tpu.dot_dimension_numbers<[2], [2], [1], [1], [0, 0, 0, 1, 1, 1], [0], [0]>} : vector<2x8x8xbf16>, vector<2x8x8xbf16>, vector<2x8x8xf32> -> vector<2x8x8xf32>
    "tpu.trace_stop"() : () -> ()
    %cst_17 = arith.constant dense<0xFF800000> : vector<2x8xf32>
    %32 = vector.multi_reduction <maximumf>, %31, %cst_17 [2] : vector<2x8x8xf32> to vector<2x8xf32>
    %33 = vector.shape_cast %32 : vector<2x8xf32> to vector<2x8x1xf32>
    %34 = vector.broadcast %33 : vector<2x8x1xf32> to vector<2x8x8xf32>
    %35 = arith.subf %31, %34 : vector<2x8x8xf32>
    %36 = math.exp %35 : vector<2x8x8xf32>
    %cst_18 = arith.constant dense<0.000000e+00> : vector<2x8xf32>
    %37 = vector.multi_reduction <add>, %36, %cst_18 [2] : vector<2x8x8xf32> to vector<2x8xf32>
    %38 = vector.shape_cast %37 : vector<2x8xf32> to vector<2x8x1xf32>
    %39 = tpu.reciprocal %38 {approx = true} : vector<2x8x1xf32> -> vector<2x8x1xf32>
    %40 = vector.broadcast %39 : vector<2x8x1xf32> to vector<2x8x8xf32>
    %41 = arith.mulf %36, %40 : vector<2x8x8xf32>
    %42 = arith.truncf %41 : vector<2x8x8xf32> to vector<2x8x8xbf16>
    "tpu.trace_start"() <{level = 10 : i32, message = "bqk,bkd->bqd"}> : () -> ()
    %cst_19 = arith.constant dense<0.000000e+00> : vector<2x8x8xf32>
    %43 = tpu.matmul %42, %30, %cst_19 {dimension_numbers = #tpu.dot_dimension_numbers<[2], [1], [1], [2], [0, 0, 0, 1, 1, 2], [0], [0]>} : vector<2x8x8xbf16>, vector<2x8x8xbf16>, vector<2x8x8xf32> -> vector<2x8x8xf32>
    "tpu.trace_stop"() : () -> ()
    %44 = vector.extract_strided_slice %20 {offsets = [0, 0, 8], sizes = [2, 8, 8], strides = [1, 1, 1]} : vector<2x8x32xf32> to vector<2x8x8xf32>
    %45 = arith.truncf %44 : vector<2x8x8xf32> to vector<2x8x8xbf16>
    %46 = vector.extract_strided_slice %22 {offsets = [0, 0, 8], sizes = [2, 8, 8], strides = [1, 1, 1]} : vector<2x8x32xf32> to vector<2x8x8xf32>
    %47 = arith.truncf %46 : vector<2x8x8xf32> to vector<2x8x8xbf16>
    %48 = vector.extract_strided_slice %24 {offsets = [0, 0, 8], sizes = [2, 8, 8], strides = [1, 1, 1]} : vector<2x8x32xf32> to vector<2x8x8xf32>
    %49 = arith.truncf %48 : vector<2x8x8xf32> to vector<2x8x8xbf16>
    "tpu.trace_start"() <{level = 10 : i32, message = "bqd,bkd->bqk"}> : () -> ()
    %cst_20 = arith.constant dense<0.000000e+00> : vector<2x8x8xf32>
    %50 = tpu.matmul %45, %47, %cst_20 {dimension_numbers = #tpu.dot_dimension_numbers<[2], [2], [1], [1], [0, 0, 0, 1, 1, 1], [0], [0]>} : vector<2x8x8xbf16>, vector<2x8x8xbf16>, vector<2x8x8xf32> -> vector<2x8x8xf32>
    "tpu.trace_stop"() : () -> ()
    %cst_21 = arith.constant dense<0xFF800000> : vector<2x8xf32>
    %51 = vector.multi_reduction <maximumf>, %50, %cst_21 [2] : vector<2x8x8xf32> to vector<2x8xf32>
    %52 = vector.shape_cast %51 : vector<2x8xf32> to vector<2x8x1xf32>
    %53 = vector.broadcast %52 : vector<2x8x1xf32> to vector<2x8x8xf32>
    %54 = arith.subf %50, %53 : vector<2x8x8xf32>
    %55 = math.exp %54 : vector<2x8x8xf32>
    %cst_22 = arith.constant dense<0.000000e+00> : vector<2x8xf32>
    %56 = vector.multi_reduction <add>, %55, %cst_22 [2] : vector<2x8x8xf32> to vector<2x8xf32>
    %57 = vector.shape_cast %56 : vector<2x8xf32> to vector<2x8x1xf32>
    %58 = tpu.reciprocal %57 {approx = true} : vector<2x8x1xf32> -> vector<2x8x1xf32>
    %59 = vector.broadcast %58 : vector<2x8x1xf32> to vector<2x8x8xf32>
    %60 = arith.mulf %55, %59 : vector<2x8x8xf32>
    %61 = arith.truncf %60 : vector<2x8x8xf32> to vector<2x8x8xbf16>
    "tpu.trace_start"() <{level = 10 : i32, message = "bqk,bkd->bqd"}> : () -> ()
    %cst_23 = arith.constant dense<0.000000e+00> : vector<2x8x8xf32>
    %62 = tpu.matmul %61, %49, %cst_23 {dimension_numbers = #tpu.dot_dimension_numbers<[2], [1], [1], [2], [0, 0, 0, 1, 1, 2], [0], [0]>} : vector<2x8x8xbf16>, vector<2x8x8xbf16>, vector<2x8x8xf32> -> vector<2x8x8xf32>
    "tpu.trace_stop"() : () -> ()
    %63 = vector.extract_strided_slice %20 {offsets = [0, 0, 16], sizes = [2, 8, 8], strides = [1, 1, 1]} : vector<2x8x32xf32> to vector<2x8x8xf32>
    %64 = arith.truncf %63 : vector<2x8x8xf32> to vector<2x8x8xbf16>
    %65 = vector.extract_strided_slice %22 {offsets = [0, 0, 16], sizes = [2, 8, 8], strides = [1, 1, 1]} : vector<2x8x32xf32> to vector<2x8x8xf32>
    %66 = arith.truncf %65 : vector<2x8x8xf32> to vector<2x8x8xbf16>
    %67 = vector.extract_strided_slice %24 {offsets = [0, 0, 16], sizes = [2, 8, 8], strides = [1, 1, 1]} : vector<2x8x32xf32> to vector<2x8x8xf32>
    %68 = arith.truncf %67 : vector<2x8x8xf32> to vector<2x8x8xbf16>
    "tpu.trace_start"() <{level = 10 : i32, message = "bqd,bkd->bqk"}> : () -> ()
    %cst_24 = arith.constant dense<0.000000e+00> : vector<2x8x8xf32>
    %69 = tpu.matmul %64, %66, %cst_24 {dimension_numbers = #tpu.dot_dimension_numbers<[2], [2], [1], [1], [0, 0, 0, 1, 1, 1], [0], [0]>} : vector<2x8x8xbf16>, vector<2x8x8xbf16>, vector<2x8x8xf32> -> vector<2x8x8xf32>
    "tpu.trace_stop"() : () -> ()
    %cst_25 = arith.constant dense<0xFF800000> : vector<2x8xf32>
    %70 = vector.multi_reduction <maximumf>, %69, %cst_25 [2] : vector<2x8x8xf32> to vector<2x8xf32>
    %71 = vector.shape_cast %70 : vector<2x8xf32> to vector<2x8x1xf32>
    %72 = vector.broadcast %71 : vector<2x8x1xf32> to vector<2x8x8xf32>
    %73 = arith.subf %69, %72 : vector<2x8x8xf32>
    %74 = math.exp %73 : vector<2x8x8xf32>
    %cst_26 = arith.constant dense<0.000000e+00> : vector<2x8xf32>
    %75 = vector.multi_reduction <add>, %74, %cst_26 [2] : vector<2x8x8xf32> to vector<2x8xf32>
    %76 = vector.shape_cast %75 : vector<2x8xf32> to vector<2x8x1xf32>
    %77 = tpu.reciprocal %76 {approx = true} : vector<2x8x1xf32> -> vector<2x8x1xf32>
    %78 = vector.broadcast %77 : vector<2x8x1xf32> to vector<2x8x8xf32>
    %79 = arith.mulf %74, %78 : vector<2x8x8xf32>
    %80 = arith.truncf %79 : vector<2x8x8xf32> to vector<2x8x8xbf16>
    "tpu.trace_start"() <{level = 10 : i32, message = "bqk,bkd->bqd"}> : () -> ()
    %cst_27 = arith.constant dense<0.000000e+00> : vector<2x8x8xf32>
    %81 = tpu.matmul %80, %68, %cst_27 {dimension_numbers = #tpu.dot_dimension_numbers<[2], [1], [1], [2], [0, 0, 0, 1, 1, 2], [0], [0]>} : vector<2x8x8xbf16>, vector<2x8x8xbf16>, vector<2x8x8xf32> -> vector<2x8x8xf32>
    "tpu.trace_stop"() : () -> ()
    %82 = vector.extract_strided_slice %20 {offsets = [0, 0, 24], sizes = [2, 8, 8], strides = [1, 1, 1]} : vector<2x8x32xf32> to vector<2x8x8xf32>
    %83 = arith.truncf %82 : vector<2x8x8xf32> to vector<2x8x8xbf16>
    %84 = vector.extract_strided_slice %22 {offsets = [0, 0, 24], sizes = [2, 8, 8], strides = [1, 1, 1]} : vector<2x8x32xf32> to vector<2x8x8xf32>
    %85 = arith.truncf %84 : vector<2x8x8xf32> to vector<2x8x8xbf16>
    %86 = vector.extract_strided_slice %24 {offsets = [0, 0, 24], sizes = [2, 8, 8], strides = [1, 1, 1]} : vector<2x8x32xf32> to vector<2x8x8xf32>
    %87 = arith.truncf %86 : vector<2x8x8xf32> to vector<2x8x8xbf16>
    "tpu.trace_start"() <{level = 10 : i32, message = "bqd,bkd->bqk"}> : () -> ()
    %cst_28 = arith.constant dense<0.000000e+00> : vector<2x8x8xf32>
    %88 = tpu.matmul %83, %85, %cst_28 {dimension_numbers = #tpu.dot_dimension_numbers<[2], [2], [1], [1], [0, 0, 0, 1, 1, 1], [0], [0]>} : vector<2x8x8xbf16>, vector<2x8x8xbf16>, vector<2x8x8xf32> -> vector<2x8x8xf32>
    "tpu.trace_stop"() : () -> ()
    %cst_29 = arith.constant dense<0xFF800000> : vector<2x8xf32>
    %89 = vector.multi_reduction <maximumf>, %88, %cst_29 [2] : vector<2x8x8xf32> to vector<2x8xf32>
    %90 = vector.shape_cast %89 : vector<2x8xf32> to vector<2x8x1xf32>
    %91 = vector.broadcast %90 : vector<2x8x1xf32> to vector<2x8x8xf32>
    %92 = arith.subf %88, %91 : vector<2x8x8xf32>
    %93 = math.exp %92 : vector<2x8x8xf32>
    %cst_30 = arith.constant dense<0.000000e+00> : vector<2x8xf32>
    %94 = vector.multi_reduction <add>, %93, %cst_30 [2] : vector<2x8x8xf32> to vector<2x8xf32>
    %95 = vector.shape_cast %94 : vector<2x8xf32> to vector<2x8x1xf32>
    %96 = tpu.reciprocal %95 {approx = true} : vector<2x8x1xf32> -> vector<2x8x1xf32>
    %97 = vector.broadcast %96 : vector<2x8x1xf32> to vector<2x8x8xf32>
    %98 = arith.mulf %93, %97 : vector<2x8x8xf32>
    %99 = arith.truncf %98 : vector<2x8x8xf32> to vector<2x8x8xbf16>
    "tpu.trace_start"() <{level = 10 : i32, message = "bqk,bkd->bqd"}> : () -> ()
    %cst_31 = arith.constant dense<0.000000e+00> : vector<2x8x8xf32>
    %100 = tpu.matmul %99, %87, %cst_31 {dimension_numbers = #tpu.dot_dimension_numbers<[2], [1], [1], [2], [0, 0, 0, 1, 1, 2], [0], [0]>} : vector<2x8x8xbf16>, vector<2x8x8xbf16>, vector<2x8x8xf32> -> vector<2x8x8xf32>
    "tpu.trace_stop"() : () -> ()
    %101 = tpu.concatenate %43, %62, %81, %100 in 2 : vector<2x8x8xf32>, vector<2x8x8xf32>, vector<2x8x8xf32>, vector<2x8x8xf32> -> vector<2x8x32xf32>
    %102 = vector.shape_cast %101 : vector<2x8x32xf32> to vector<16x32xf32>
    %103 = arith.truncf %102 : vector<16x32xf32> to vector<16x32xbf16>
    %c0_32 = arith.constant 0 : index
    %c0_33 = arith.constant 0 : index
    %c0_34 = arith.constant 0 : index
    %104 = vector.load %arg3[%c0_32, %c0_33, %c0_34] : memref<2x32x32xbf16, #tpu.memory_space<vmem>>, vector<1x32x32xbf16>
    %105 = vector.shape_cast %104 : vector<1x32x32xbf16> to vector<32x32xbf16>
    %cst_35 = arith.constant dense<0.000000e+00> : vector<16x32xf32>
    %106 = tpu.matmul %103, %105, %cst_35 {dimension_numbers = #tpu.dot_dimension_numbers<[1], [0], [0], [1], [0, 0, 1, 1], [], []>} : vector<16x32xbf16>, vector<32x32xbf16>, vector<16x32xf32> -> vector<16x32xf32>
    %107 = vector.broadcast %5 : vector<1x32xf32> to vector<16x32xf32>
    %108 = arith.addf %106, %107 : vector<16x32xf32>
    %109 = arith.addf %2, %108 : vector<16x32xf32>
    %cst_36 = arith.constant dense<0.000000e+00> : vector<16xf32>
    %110 = vector.multi_reduction <add>, %109, %cst_36 [1] : vector<16x32xf32> to vector<16xf32>
    %111 = vector.shape_cast %110 : vector<16xf32> to vector<16x1xf32>
    %cst_37 = arith.constant 3.200000e+01 : f32
    %112 = vector.broadcast %cst_37 : f32 to vector<16x1xf32>
    %113 = arith.divf %111, %112 : vector<16x1xf32>
    %114 = vector.broadcast %113 : vector<16x1xf32> to vector<16x32xf32>
    %115 = arith.subf %109, %114 : vector<16x32xf32>
    %116 = arith.mulf %115, %115 : vector<16x32xf32>
    %cst_38 = arith.constant dense<0.000000e+00> : vector<16xf32>
    %117 = vector.multi_reduction <add>, %116, %cst_38 [1] : vector<16x32xf32> to vector<16xf32>
    %118 = vector.shape_cast %117 : vector<16xf32> to vector<16x1xf32>
    %cst_39 = arith.constant 3.200000e+01 : f32
    %119 = vector.broadcast %cst_39 : f32 to vector<16x1xf32>
    %120 = arith.divf %118, %119 : vector<16x1xf32>
    %121 = vector.broadcast %113 : vector<16x1xf32> to vector<16x32xf32>
    %122 = arith.subf %109, %121 : vector<16x32xf32>
    %cst_40 = arith.constant 9.99999974E-6 : f32
    %123 = vector.broadcast %cst_40 : f32 to vector<16x1xf32>
    %124 = arith.addf %120, %123 : vector<16x1xf32>
    %125 = math.rsqrt %124 : vector<16x1xf32>
    %126 = vector.broadcast %125 : vector<16x1xf32> to vector<16x32xf32>
    %127 = arith.mulf %122, %126 : vector<16x32xf32>
    %128 = vector.broadcast %7 : vector<1x32xf32> to vector<16x32xf32>
    %129 = arith.mulf %127, %128 : vector<16x32xf32>
    %130 = vector.broadcast %8 : vector<1x32xf32> to vector<16x32xf32>
    %131 = arith.addf %129, %130 : vector<16x32xf32>
    %132 = arith.truncf %131 : vector<16x32xf32> to vector<16x32xbf16>
    %c0_41 = arith.constant 0 : index
    %c0_42 = arith.constant 0 : index
    %c0_43 = arith.constant 0 : index
    %133 = vector.load %arg4[%c0_41, %c0_42, %c0_43] : memref<2x32x128xbf16, #tpu.memory_space<vmem>>, vector<1x32x128xbf16>
    %134 = vector.shape_cast %133 : vector<1x32x128xbf16> to vector<32x128xbf16>
    %cst_44 = arith.constant dense<0.000000e+00> : vector<16x128xf32>
    %135 = tpu.matmul %132, %134, %cst_44 {dimension_numbers = #tpu.dot_dimension_numbers<[1], [0], [0], [1], [0, 0, 1, 1], [], []>} : vector<16x32xbf16>, vector<32x128xbf16>, vector<16x128xf32> -> vector<16x128xf32>
    %136 = vector.broadcast %4 : vector<1x128xf32> to vector<16x128xf32>
    %137 = arith.addf %135, %136 : vector<16x128xf32>
    %cst_45 = arith.constant 0.000000e+00 : f32
    %138 = vector.broadcast %cst_45 : f32 to vector<16x128xf32>
    %139 = arith.maximumf %137, %138 : vector<16x128xf32>
    %140 = arith.truncf %139 : vector<16x128xf32> to vector<16x128xbf16>
    %c0_46 = arith.constant 0 : index
    %c0_47 = arith.constant 0 : index
    %c0_48 = arith.constant 0 : index
    %141 = vector.load %arg5[%c0_46, %c0_47, %c0_48] : memref<2x128x32xbf16, #tpu.memory_space<vmem>>, vector<1x128x32xbf16>
    %142 = vector.shape_cast %141 : vector<1x128x32xbf16> to vector<128x32xbf16>
    %cst_49 = arith.constant dense<0.000000e+00> : vector<16x32xf32>
    %143 = tpu.matmul %140, %142, %cst_49 {dimension_numbers = #tpu.dot_dimension_numbers<[1], [0], [0], [1], [0, 0, 1, 1], [], []>} : vector<16x128xbf16>, vector<128x32xbf16>, vector<16x32xf32> -> vector<16x32xf32>
    %144 = vector.broadcast %6 : vector<1x32xf32> to vector<16x32xf32>
    %145 = arith.addf %143, %144 : vector<16x32xf32>
    %146 = arith.addf %131, %145 : vector<16x32xf32>
    %cst_50 = arith.constant dense<0.000000e+00> : vector<16xf32>
    %147 = vector.multi_reduction <add>, %146, %cst_50 [1] : vector<16x32xf32> to vector<16xf32>
    %148 = vector.shape_cast %147 : vector<16xf32> to vector<16x1xf32>
    %cst_51 = arith.constant 3.200000e+01 : f32
    %149 = vector.broadcast %cst_51 : f32 to vector<16x1xf32>
    %150 = arith.divf %148, %149 : vector<16x1xf32>
    %151 = vector.broadcast %150 : vector<16x1xf32> to vector<16x32xf32>
    %152 = arith.subf %146, %151 : vector<16x32xf32>
    %153 = arith.mulf %152, %152 : vector<16x32xf32>
    %cst_52 = arith.constant dense<0.000000e+00> : vector<16xf32>
    %154 = vector.multi_reduction <add>, %153, %cst_52 [1] : vector<16x32xf32> to vector<16xf32>
    %155 = vector.shape_cast %154 : vector<16xf32> to vector<16x1xf32>
    %cst_53 = arith.constant 3.200000e+01 : f32
    %156 = vector.broadcast %cst_53 : f32 to vector<16x1xf32>
    %157 = arith.divf %155, %156 : vector<16x1xf32>
    %158 = vector.broadcast %150 : vector<16x1xf32> to vector<16x32xf32>
    %159 = arith.subf %146, %158 : vector<16x32xf32>
    %cst_54 = arith.constant 9.99999974E-6 : f32
    %160 = vector.broadcast %cst_54 : f32 to vector<16x1xf32>
    %161 = arith.addf %157, %160 : vector<16x1xf32>
    %162 = math.rsqrt %161 : vector<16x1xf32>
    %163 = vector.broadcast %162 : vector<16x1xf32> to vector<16x32xf32>
    %164 = arith.mulf %159, %163 : vector<16x32xf32>
    %165 = vector.broadcast %9 : vector<1x32xf32> to vector<16x32xf32>
    %166 = arith.mulf %164, %165 : vector<16x32xf32>
    %167 = vector.broadcast %10 : vector<1x32xf32> to vector<16x32xf32>
    %168 = arith.addf %166, %167 : vector<16x32xf32>
    %c8 = arith.constant 8 : index
    %c0_55 = arith.constant 0 : index
    %169 = vector.load %arg6[%c8, %c0_55] : memref<18x128xf32, #tpu.memory_space<vmem>>, vector<1x96xf32>
    %c9 = arith.constant 9 : index
    %c0_56 = arith.constant 0 : index
    %170 = vector.load %arg6[%c9, %c0_56] : memref<18x128xf32, #tpu.memory_space<vmem>>, vector<1x128xf32>
    %c10 = arith.constant 10 : index
    %c0_57 = arith.constant 0 : index
    %171 = vector.load %arg6[%c10, %c0_57] : memref<18x128xf32, #tpu.memory_space<vmem>>, vector<1x32xf32>
    %c11 = arith.constant 11 : index
    %c0_58 = arith.constant 0 : index
    %172 = vector.load %arg6[%c11, %c0_58] : memref<18x128xf32, #tpu.memory_space<vmem>>, vector<1x32xf32>
    %c12 = arith.constant 12 : index
    %c0_59 = arith.constant 0 : index
    %173 = vector.load %arg6[%c12, %c0_59] : memref<18x128xf32, #tpu.memory_space<vmem>>, vector<1x32xf32>
    %c13 = arith.constant 13 : index
    %c0_60 = arith.constant 0 : index
    %174 = vector.load %arg6[%c13, %c0_60] : memref<18x128xf32, #tpu.memory_space<vmem>>, vector<1x32xf32>
    %c14 = arith.constant 14 : index
    %c0_61 = arith.constant 0 : index
    %175 = vector.load %arg6[%c14, %c0_61] : memref<18x128xf32, #tpu.memory_space<vmem>>, vector<1x32xf32>
    %c15 = arith.constant 15 : index
    %c0_62 = arith.constant 0 : index
    %176 = vector.load %arg6[%c15, %c0_62] : memref<18x128xf32, #tpu.memory_space<vmem>>, vector<1x32xf32>
    %177 = arith.truncf %168 : vector<16x32xf32> to vector<16x32xbf16>
    %c1_63 = arith.constant 1 : index
    %c0_64 = arith.constant 0 : index
    %c0_65 = arith.constant 0 : index
    %178 = vector.load %arg2[%c1_63, %c0_64, %c0_65] : memref<2x32x96xbf16, #tpu.memory_space<vmem>>, vector<1x32x96xbf16>
    %179 = vector.shape_cast %178 : vector<1x32x96xbf16> to vector<32x96xbf16>
    %cst_66 = arith.constant dense<0.000000e+00> : vector<16x96xf32>
    %180 = tpu.matmul %177, %179, %cst_66 {dimension_numbers = #tpu.dot_dimension_numbers<[1], [0], [0], [1], [0, 0, 1, 1], [], []>} : vector<16x32xbf16>, vector<32x96xbf16>, vector<16x96xf32> -> vector<16x96xf32>
    %181 = vector.broadcast %169 : vector<1x96xf32> to vector<16x96xf32>
    %182 = arith.addf %180, %181 : vector<16x96xf32>
    %183 = vector.extract_strided_slice %182 {offsets = [0, 0], sizes = [16, 32], strides = [1, 1]} : vector<16x96xf32> to vector<16x32xf32>
    %cst_67 = arith.constant 0.353553385 : f32
    %184 = vector.broadcast %cst_67 : f32 to vector<16x32xf32>
    %185 = arith.mulf %183, %184 : vector<16x32xf32>
    %186 = vector.shape_cast %185 : vector<16x32xf32> to vector<2x8x32xf32>
    %187 = vector.extract_strided_slice %182 {offsets = [0, 32], sizes = [16, 32], strides = [1, 1]} : vector<16x96xf32> to vector<16x32xf32>
    %188 = vector.shape_cast %187 : vector<16x32xf32> to vector<2x8x32xf32>
    %189 = vector.extract_strided_slice %182 {offsets = [0, 64], sizes = [16, 32], strides = [1, 1]} : vector<16x96xf32> to vector<16x32xf32>
    %190 = vector.shape_cast %189 : vector<16x32xf32> to vector<2x8x32xf32>
    %191 = vector.extract_strided_slice %186 {offsets = [0, 0, 0], sizes = [2, 8, 8], strides = [1, 1, 1]} : vector<2x8x32xf32> to vector<2x8x8xf32>
    %192 = arith.truncf %191 : vector<2x8x8xf32> to vector<2x8x8xbf16>
    %193 = vector.extract_strided_slice %188 {offsets = [0, 0, 0], sizes = [2, 8, 8], strides = [1, 1, 1]} : vector<2x8x32xf32> to vector<2x8x8xf32>
    %194 = arith.truncf %193 : vector<2x8x8xf32> to vector<2x8x8xbf16>
    %195 = vector.extract_strided_slice %190 {offsets = [0, 0, 0], sizes = [2, 8, 8], strides = [1, 1, 1]} : vector<2x8x32xf32> to vector<2x8x8xf32>
    %196 = arith.truncf %195 : vector<2x8x8xf32> to vector<2x8x8xbf16>
    "tpu.trace_start"() <{level = 10 : i32, message = "bqd,bkd->bqk"}> : () -> ()
    %cst_68 = arith.constant dense<0.000000e+00> : vector<2x8x8xf32>
    %197 = tpu.matmul %192, %194, %cst_68 {dimension_numbers = #tpu.dot_dimension_numbers<[2], [2], [1], [1], [0, 0, 0, 1, 1, 1], [0], [0]>} : vector<2x8x8xbf16>, vector<2x8x8xbf16>, vector<2x8x8xf32> -> vector<2x8x8xf32>
    "tpu.trace_stop"() : () -> ()
    %cst_69 = arith.constant dense<0xFF800000> : vector<2x8xf32>
    %198 = vector.multi_reduction <maximumf>, %197, %cst_69 [2] : vector<2x8x8xf32> to vector<2x8xf32>
    %199 = vector.shape_cast %198 : vector<2x8xf32> to vector<2x8x1xf32>
    %200 = vector.broadcast %199 : vector<2x8x1xf32> to vector<2x8x8xf32>
    %201 = arith.subf %197, %200 : vector<2x8x8xf32>
    %202 = math.exp %201 : vector<2x8x8xf32>
    %cst_70 = arith.constant dense<0.000000e+00> : vector<2x8xf32>
    %203 = vector.multi_reduction <add>, %202, %cst_70 [2] : vector<2x8x8xf32> to vector<2x8xf32>
    %204 = vector.shape_cast %203 : vector<2x8xf32> to vector<2x8x1xf32>
    %205 = tpu.reciprocal %204 {approx = true} : vector<2x8x1xf32> -> vector<2x8x1xf32>
    %206 = vector.broadcast %205 : vector<2x8x1xf32> to vector<2x8x8xf32>
    %207 = arith.mulf %202, %206 : vector<2x8x8xf32>
    %208 = arith.truncf %207 : vector<2x8x8xf32> to vector<2x8x8xbf16>
    "tpu.trace_start"() <{level = 10 : i32, message = "bqk,bkd->bqd"}> : () -> ()
    %cst_71 = arith.constant dense<0.000000e+00> : vector<2x8x8xf32>
    %209 = tpu.matmul %208, %196, %cst_71 {dimension_numbers = #tpu.dot_dimension_numbers<[2], [1], [1], [2], [0, 0, 0, 1, 1, 2], [0], [0]>} : vector<2x8x8xbf16>, vector<2x8x8xbf16>, vector<2x8x8xf32> -> vector<2x8x8xf32>
    "tpu.trace_stop"() : () -> ()
    %210 = vector.extract_strided_slice %186 {offsets = [0, 0, 8], sizes = [2, 8, 8], strides = [1, 1, 1]} : vector<2x8x32xf32> to vector<2x8x8xf32>
    %211 = arith.truncf %210 : vector<2x8x8xf32> to vector<2x8x8xbf16>
    %212 = vector.extract_strided_slice %188 {offsets = [0, 0, 8], sizes = [2, 8, 8], strides = [1, 1, 1]} : vector<2x8x32xf32> to vector<2x8x8xf32>
    %213 = arith.truncf %212 : vector<2x8x8xf32> to vector<2x8x8xbf16>
    %214 = vector.extract_strided_slice %190 {offsets = [0, 0, 8], sizes = [2, 8, 8], strides = [1, 1, 1]} : vector<2x8x32xf32> to vector<2x8x8xf32>
    %215 = arith.truncf %214 : vector<2x8x8xf32> to vector<2x8x8xbf16>
    "tpu.trace_start"() <{level = 10 : i32, message = "bqd,bkd->bqk"}> : () -> ()
    %cst_72 = arith.constant dense<0.000000e+00> : vector<2x8x8xf32>
    %216 = tpu.matmul %211, %213, %cst_72 {dimension_numbers = #tpu.dot_dimension_numbers<[2], [2], [1], [1], [0, 0, 0, 1, 1, 1], [0], [0]>} : vector<2x8x8xbf16>, vector<2x8x8xbf16>, vector<2x8x8xf32> -> vector<2x8x8xf32>
    "tpu.trace_stop"() : () -> ()
    %cst_73 = arith.constant dense<0xFF800000> : vector<2x8xf32>
    %217 = vector.multi_reduction <maximumf>, %216, %cst_73 [2] : vector<2x8x8xf32> to vector<2x8xf32>
    %218 = vector.shape_cast %217 : vector<2x8xf32> to vector<2x8x1xf32>
    %219 = vector.broadcast %218 : vector<2x8x1xf32> to vector<2x8x8xf32>
    %220 = arith.subf %216, %219 : vector<2x8x8xf32>
    %221 = math.exp %220 : vector<2x8x8xf32>
    %cst_74 = arith.constant dense<0.000000e+00> : vector<2x8xf32>
    %222 = vector.multi_reduction <add>, %221, %cst_74 [2] : vector<2x8x8xf32> to vector<2x8xf32>
    %223 = vector.shape_cast %222 : vector<2x8xf32> to vector<2x8x1xf32>
    %224 = tpu.reciprocal %223 {approx = true} : vector<2x8x1xf32> -> vector<2x8x1xf32>
    %225 = vector.broadcast %224 : vector<2x8x1xf32> to vector<2x8x8xf32>
    %226 = arith.mulf %221, %225 : vector<2x8x8xf32>
    %227 = arith.truncf %226 : vector<2x8x8xf32> to vector<2x8x8xbf16>
    "tpu.trace_start"() <{level = 10 : i32, message = "bqk,bkd->bqd"}> : () -> ()
    %cst_75 = arith.constant dense<0.000000e+00> : vector<2x8x8xf32>
    %228 = tpu.matmul %227, %215, %cst_75 {dimension_numbers = #tpu.dot_dimension_numbers<[2], [1], [1], [2], [0, 0, 0, 1, 1, 2], [0], [0]>} : vector<2x8x8xbf16>, vector<2x8x8xbf16>, vector<2x8x8xf32> -> vector<2x8x8xf32>
    "tpu.trace_stop"() : () -> ()
    %229 = vector.extract_strided_slice %186 {offsets = [0, 0, 16], sizes = [2, 8, 8], strides = [1, 1, 1]} : vector<2x8x32xf32> to vector<2x8x8xf32>
    %230 = arith.truncf %229 : vector<2x8x8xf32> to vector<2x8x8xbf16>
    %231 = vector.extract_strided_slice %188 {offsets = [0, 0, 16], sizes = [2, 8, 8], strides = [1, 1, 1]} : vector<2x8x32xf32> to vector<2x8x8xf32>
    %232 = arith.truncf %231 : vector<2x8x8xf32> to vector<2x8x8xbf16>
    %233 = vector.extract_strided_slice %190 {offsets = [0, 0, 16], sizes = [2, 8, 8], strides = [1, 1, 1]} : vector<2x8x32xf32> to vector<2x8x8xf32>
    %234 = arith.truncf %233 : vector<2x8x8xf32> to vector<2x8x8xbf16>
    "tpu.trace_start"() <{level = 10 : i32, message = "bqd,bkd->bqk"}> : () -> ()
    %cst_76 = arith.constant dense<0.000000e+00> : vector<2x8x8xf32>
    %235 = tpu.matmul %230, %232, %cst_76 {dimension_numbers = #tpu.dot_dimension_numbers<[2], [2], [1], [1], [0, 0, 0, 1, 1, 1], [0], [0]>} : vector<2x8x8xbf16>, vector<2x8x8xbf16>, vector<2x8x8xf32> -> vector<2x8x8xf32>
    "tpu.trace_stop"() : () -> ()
    %cst_77 = arith.constant dense<0xFF800000> : vector<2x8xf32>
    %236 = vector.multi_reduction <maximumf>, %235, %cst_77 [2] : vector<2x8x8xf32> to vector<2x8xf32>
    %237 = vector.shape_cast %236 : vector<2x8xf32> to vector<2x8x1xf32>
    %238 = vector.broadcast %237 : vector<2x8x1xf32> to vector<2x8x8xf32>
    %239 = arith.subf %235, %238 : vector<2x8x8xf32>
    %240 = math.exp %239 : vector<2x8x8xf32>
    %cst_78 = arith.constant dense<0.000000e+00> : vector<2x8xf32>
    %241 = vector.multi_reduction <add>, %240, %cst_78 [2] : vector<2x8x8xf32> to vector<2x8xf32>
    %242 = vector.shape_cast %241 : vector<2x8xf32> to vector<2x8x1xf32>
    %243 = tpu.reciprocal %242 {approx = true} : vector<2x8x1xf32> -> vector<2x8x1xf32>
    %244 = vector.broadcast %243 : vector<2x8x1xf32> to vector<2x8x8xf32>
    %245 = arith.mulf %240, %244 : vector<2x8x8xf32>
    %246 = arith.truncf %245 : vector<2x8x8xf32> to vector<2x8x8xbf16>
    "tpu.trace_start"() <{level = 10 : i32, message = "bqk,bkd->bqd"}> : () -> ()
    %cst_79 = arith.constant dense<0.000000e+00> : vector<2x8x8xf32>
    %247 = tpu.matmul %246, %234, %cst_79 {dimension_numbers = #tpu.dot_dimension_numbers<[2], [1], [1], [2], [0, 0, 0, 1, 1, 2], [0], [0]>} : vector<2x8x8xbf16>, vector<2x8x8xbf16>, vector<2x8x8xf32> -> vector<2x8x8xf32>
    "tpu.trace_stop"() : () -> ()
    %248 = vector.extract_strided_slice %186 {offsets = [0, 0, 24], sizes = [2, 8, 8], strides = [1, 1, 1]} : vector<2x8x32xf32> to vector<2x8x8xf32>
    %249 = arith.truncf %248 : vector<2x8x8xf32> to vector<2x8x8xbf16>
    %250 = vector.extract_strided_slice %188 {offsets = [0, 0, 24], sizes = [2, 8, 8], strides = [1, 1, 1]} : vector<2x8x32xf32> to vector<2x8x8xf32>
    %251 = arith.truncf %250 : vector<2x8x8xf32> to vector<2x8x8xbf16>
    %252 = vector.extract_strided_slice %190 {offsets = [0, 0, 24], sizes = [2, 8, 8], strides = [1, 1, 1]} : vector<2x8x32xf32> to vector<2x8x8xf32>
    %253 = arith.truncf %252 : vector<2x8x8xf32> to vector<2x8x8xbf16>
    "tpu.trace_start"() <{level = 10 : i32, message = "bqd,bkd->bqk"}> : () -> ()
    %cst_80 = arith.constant dense<0.000000e+00> : vector<2x8x8xf32>
    %254 = tpu.matmul %249, %251, %cst_80 {dimension_numbers = #tpu.dot_dimension_numbers<[2], [2], [1], [1], [0, 0, 0, 1, 1, 1], [0], [0]>} : vector<2x8x8xbf16>, vector<2x8x8xbf16>, vector<2x8x8xf32> -> vector<2x8x8xf32>
    "tpu.trace_stop"() : () -> ()
    %cst_81 = arith.constant dense<0xFF800000> : vector<2x8xf32>
    %255 = vector.multi_reduction <maximumf>, %254, %cst_81 [2] : vector<2x8x8xf32> to vector<2x8xf32>
    %256 = vector.shape_cast %255 : vector<2x8xf32> to vector<2x8x1xf32>
    %257 = vector.broadcast %256 : vector<2x8x1xf32> to vector<2x8x8xf32>
    %258 = arith.subf %254, %257 : vector<2x8x8xf32>
    %259 = math.exp %258 : vector<2x8x8xf32>
    %cst_82 = arith.constant dense<0.000000e+00> : vector<2x8xf32>
    %260 = vector.multi_reduction <add>, %259, %cst_82 [2] : vector<2x8x8xf32> to vector<2x8xf32>
    %261 = vector.shape_cast %260 : vector<2x8xf32> to vector<2x8x1xf32>
    %262 = tpu.reciprocal %261 {approx = true} : vector<2x8x1xf32> -> vector<2x8x1xf32>
    %263 = vector.broadcast %262 : vector<2x8x1xf32> to vector<2x8x8xf32>
    %264 = arith.mulf %259, %263 : vector<2x8x8xf32>
    %265 = arith.truncf %264 : vector<2x8x8xf32> to vector<2x8x8xbf16>
    "tpu.trace_start"() <{level = 10 : i32, message = "bqk,bkd->bqd"}> : () -> ()
    %cst_83 = arith.constant dense<0.000000e+00> : vector<2x8x8xf32>
    %266 = tpu.matmul %265, %253, %cst_83 {dimension_numbers = #tpu.dot_dimension_numbers<[2], [1], [1], [2], [0, 0, 0, 1, 1, 2], [0], [0]>} : vector<2x8x8xbf16>, vector<2x8x8xbf16>, vector<2x8x8xf32> -> vector<2x8x8xf32>
    "tpu.trace_stop"() : () -> ()
    %267 = tpu.concatenate %209, %228, %247, %266 in 2 : vector<2x8x8xf32>, vector<2x8x8xf32>, vector<2x8x8xf32>, vector<2x8x8xf32> -> vector<2x8x32xf32>
    %268 = vector.shape_cast %267 : vector<2x8x32xf32> to vector<16x32xf32>
    %269 = arith.truncf %268 : vector<16x32xf32> to vector<16x32xbf16>
    %c1_84 = arith.constant 1 : index
    %c0_85 = arith.constant 0 : index
    %c0_86 = arith.constant 0 : index
    %270 = vector.load %arg3[%c1_84, %c0_85, %c0_86] : memref<2x32x32xbf16, #tpu.memory_space<vmem>>, vector<1x32x32xbf16>
    %271 = vector.shape_cast %270 : vector<1x32x32xbf16> to vector<32x32xbf16>
    %cst_87 = arith.constant dense<0.000000e+00> : vector<16x32xf32>
    %272 = tpu.matmul %269, %271, %cst_87 {dimension_numbers = #tpu.dot_dimension_numbers<[1], [0], [0], [1], [0, 0, 1, 1], [], []>} : vector<16x32xbf16>, vector<32x32xbf16>, vector<16x32xf32> -> vector<16x32xf32>
    %273 = vector.broadcast %171 : vector<1x32xf32> to vector<16x32xf32>
    %274 = arith.addf %272, %273 : vector<16x32xf32>
    %275 = arith.addf %168, %274 : vector<16x32xf32>
    %cst_88 = arith.constant dense<0.000000e+00> : vector<16xf32>
    %276 = vector.multi_reduction <add>, %275, %cst_88 [1] : vector<16x32xf32> to vector<16xf32>
    %277 = vector.shape_cast %276 : vector<16xf32> to vector<16x1xf32>
    %cst_89 = arith.constant 3.200000e+01 : f32
    %278 = vector.broadcast %cst_89 : f32 to vector<16x1xf32>
    %279 = arith.divf %277, %278 : vector<16x1xf32>
    %280 = vector.broadcast %279 : vector<16x1xf32> to vector<16x32xf32>
    %281 = arith.subf %275, %280 : vector<16x32xf32>
    %282 = arith.mulf %281, %281 : vector<16x32xf32>
    %cst_90 = arith.constant dense<0.000000e+00> : vector<16xf32>
    %283 = vector.multi_reduction <add>, %282, %cst_90 [1] : vector<16x32xf32> to vector<16xf32>
    %284 = vector.shape_cast %283 : vector<16xf32> to vector<16x1xf32>
    %cst_91 = arith.constant 3.200000e+01 : f32
    %285 = vector.broadcast %cst_91 : f32 to vector<16x1xf32>
    %286 = arith.divf %284, %285 : vector<16x1xf32>
    %287 = vector.broadcast %279 : vector<16x1xf32> to vector<16x32xf32>
    %288 = arith.subf %275, %287 : vector<16x32xf32>
    %cst_92 = arith.constant 9.99999974E-6 : f32
    %289 = vector.broadcast %cst_92 : f32 to vector<16x1xf32>
    %290 = arith.addf %286, %289 : vector<16x1xf32>
    %291 = math.rsqrt %290 : vector<16x1xf32>
    %292 = vector.broadcast %291 : vector<16x1xf32> to vector<16x32xf32>
    %293 = arith.mulf %288, %292 : vector<16x32xf32>
    %294 = vector.broadcast %173 : vector<1x32xf32> to vector<16x32xf32>
    %295 = arith.mulf %293, %294 : vector<16x32xf32>
    %296 = vector.broadcast %174 : vector<1x32xf32> to vector<16x32xf32>
    %297 = arith.addf %295, %296 : vector<16x32xf32>
    %298 = arith.truncf %297 : vector<16x32xf32> to vector<16x32xbf16>
    %c1_93 = arith.constant 1 : index
    %c0_94 = arith.constant 0 : index
    %c0_95 = arith.constant 0 : index
    %299 = vector.load %arg4[%c1_93, %c0_94, %c0_95] : memref<2x32x128xbf16, #tpu.memory_space<vmem>>, vector<1x32x128xbf16>
    %300 = vector.shape_cast %299 : vector<1x32x128xbf16> to vector<32x128xbf16>
    %cst_96 = arith.constant dense<0.000000e+00> : vector<16x128xf32>
    %301 = tpu.matmul %298, %300, %cst_96 {dimension_numbers = #tpu.dot_dimension_numbers<[1], [0], [0], [1], [0, 0, 1, 1], [], []>} : vector<16x32xbf16>, vector<32x128xbf16>, vector<16x128xf32> -> vector<16x128xf32>
    %302 = vector.broadcast %170 : vector<1x128xf32> to vector<16x128xf32>
    %303 = arith.addf %301, %302 : vector<16x128xf32>
    %cst_97 = arith.constant 0.000000e+00 : f32
    %304 = vector.broadcast %cst_97 : f32 to vector<16x128xf32>
    %305 = arith.maximumf %303, %304 : vector<16x128xf32>
    %306 = arith.truncf %305 : vector<16x128xf32> to vector<16x128xbf16>
    %c1_98 = arith.constant 1 : index
    %c0_99 = arith.constant 0 : index
    %c0_100 = arith.constant 0 : index
    %307 = vector.load %arg5[%c1_98, %c0_99, %c0_100] : memref<2x128x32xbf16, #tpu.memory_space<vmem>>, vector<1x128x32xbf16>
    %308 = vector.shape_cast %307 : vector<1x128x32xbf16> to vector<128x32xbf16>
    %cst_101 = arith.constant dense<0.000000e+00> : vector<16x32xf32>
    %309 = tpu.matmul %306, %308, %cst_101 {dimension_numbers = #tpu.dot_dimension_numbers<[1], [0], [0], [1], [0, 0, 1, 1], [], []>} : vector<16x128xbf16>, vector<128x32xbf16>, vector<16x32xf32> -> vector<16x32xf32>
    %310 = vector.broadcast %172 : vector<1x32xf32> to vector<16x32xf32>
    %311 = arith.addf %309, %310 : vector<16x32xf32>
    %312 = arith.addf %297, %311 : vector<16x32xf32>
    %cst_102 = arith.constant dense<0.000000e+00> : vector<16xf32>
    %313 = vector.multi_reduction <add>, %312, %cst_102 [1] : vector<16x32xf32> to vector<16xf32>
    %314 = vector.shape_cast %313 : vector<16xf32> to vector<16x1xf32>
    %cst_103 = arith.constant 3.200000e+01 : f32
    %315 = vector.broadcast %cst_103 : f32 to vector<16x1xf32>
    %316 = arith.divf %314, %315 : vector<16x1xf32>
    %317 = vector.broadcast %316 : vector<16x1xf32> to vector<16x32xf32>
    %318 = arith.subf %312, %317 : vector<16x32xf32>
    %319 = arith.mulf %318, %318 : vector<16x32xf32>
    %cst_104 = arith.constant dense<0.000000e+00> : vector<16xf32>
    %320 = vector.multi_reduction <add>, %319, %cst_104 [1] : vector<16x32xf32> to vector<16xf32>
    %321 = vector.shape_cast %320 : vector<16xf32> to vector<16x1xf32>
    %cst_105 = arith.constant 3.200000e+01 : f32
    %322 = vector.broadcast %cst_105 : f32 to vector<16x1xf32>
    %323 = arith.divf %321, %322 : vector<16x1xf32>
    %324 = vector.broadcast %316 : vector<16x1xf32> to vector<16x32xf32>
    %325 = arith.subf %312, %324 : vector<16x32xf32>
    %cst_106 = arith.constant 9.99999974E-6 : f32
    %326 = vector.broadcast %cst_106 : f32 to vector<16x1xf32>
    %327 = arith.addf %323, %326 : vector<16x1xf32>
    %328 = math.rsqrt %327 : vector<16x1xf32>
    %329 = vector.broadcast %328 : vector<16x1xf32> to vector<16x32xf32>
    %330 = arith.mulf %325, %329 : vector<16x32xf32>
    %331 = vector.broadcast %175 : vector<1x32xf32> to vector<16x32xf32>
    %332 = arith.mulf %330, %331 : vector<16x32xf32>
    %333 = vector.broadcast %176 : vector<1x32xf32> to vector<16x32xf32>
    %334 = arith.addf %332, %333 : vector<16x32xf32>
    %c16 = arith.constant 16 : index
    %c0_107 = arith.constant 0 : index
    %335 = vector.load %arg6[%c16, %c0_107] : memref<18x128xf32, #tpu.memory_space<vmem>>, vector<1x32xf32>
    %c17 = arith.constant 17 : index
    %c0_108 = arith.constant 0 : index
    %336 = vector.load %arg6[%c17, %c0_108] : memref<18x128xf32, #tpu.memory_space<vmem>>, vector<1x32xf32>
    %cst_109 = arith.constant dense<0.000000e+00> : vector<16xf32>
    %337 = vector.multi_reduction <add>, %334, %cst_109 [1] : vector<16x32xf32> to vector<16xf32>
    %338 = vector.shape_cast %337 : vector<16xf32> to vector<16x1xf32>
    %cst_110 = arith.constant 3.200000e+01 : f32
    %339 = vector.broadcast %cst_110 : f32 to vector<16x1xf32>
    %340 = arith.divf %338, %339 : vector<16x1xf32>
    %341 = vector.broadcast %340 : vector<16x1xf32> to vector<16x32xf32>
    %342 = arith.subf %334, %341 : vector<16x32xf32>
    %343 = arith.mulf %342, %342 : vector<16x32xf32>
    %cst_111 = arith.constant dense<0.000000e+00> : vector<16xf32>
    %344 = vector.multi_reduction <add>, %343, %cst_111 [1] : vector<16x32xf32> to vector<16xf32>
    %345 = vector.shape_cast %344 : vector<16xf32> to vector<16x1xf32>
    %cst_112 = arith.constant 3.200000e+01 : f32
    %346 = vector.broadcast %cst_112 : f32 to vector<16x1xf32>
    %347 = arith.divf %345, %346 : vector<16x1xf32>
    %348 = vector.broadcast %340 : vector<16x1xf32> to vector<16x32xf32>
    %349 = arith.subf %334, %348 : vector<16x32xf32>
    %cst_113 = arith.constant 9.99999974E-6 : f32
    %350 = vector.broadcast %cst_113 : f32 to vector<16x1xf32>
    %351 = arith.addf %347, %350 : vector<16x1xf32>
    %352 = math.rsqrt %351 : vector<16x1xf32>
    %353 = vector.broadcast %352 : vector<16x1xf32> to vector<16x32xf32>
    %354 = arith.mulf %349, %353 : vector<16x32xf32>
    %355 = vector.broadcast %335 : vector<1x32xf32> to vector<16x32xf32>
    %356 = arith.mulf %354, %355 : vector<16x32xf32>
    %357 = vector.broadcast %336 : vector<1x32xf32> to vector<16x32xf32>
    %358 = arith.addf %356, %357 : vector<16x32xf32>
    %c0_114 = arith.constant 0 : index
    %c0_115 = arith.constant 0 : index
    %359 = vector.load %arg7[%c0_114, %c0_115] : memref<16x32xf32, #tpu.memory_space<vmem>>, vector<16x32xf32>
    tpu.vector_store %arg7[%c0_114, %c0_115], %358 {strides = array<i32>} : memref<16x32xf32, #tpu.memory_space<vmem>>, vector<16x32xf32>,
    return
  }
}

</mosaic_0001>

<bundles_post_ra>
// kernel: transformer_forward.1
= control target key start
LH: loop header
LB: loop body
LE: loop exit
PB: predicated region body
PF: predicated region fallthrough
CT: control target
= control target key end

     0   :  { %v3400_v1 = vmov 0.0   ;;  %vm3401_vm0 = vmmov 0   ;;  %vm63_vm1 = vcmask 261120   ;;  %s4057_s0 = inlined_call_operand.vmem [shape: f32[16,32], index: 0, kind: input, shape index: {}]   ;;  %s4058_s1 = inlined_call_operand.vmem [shape: f32[16,32], index: 1, kind: input, shape index: {}]   ;;  %s4059_s2 = inlined_call_operand.vmem [shape: bf16[2,32,96], index: 2, kind: input, shape index: {}]   ;;  %s4060_s3 = inlined_call_operand.vmem [shape: bf16[2,32,32], index: 3, kind: input, shape index: {}]   ;;  %s4061_s4 = inlined_call_operand.vmem [shape: bf16[2,32,128], index: 4, kind: input, shape index: {}]   ;;  %s4062_s5 = inlined_call_operand.vmem [shape: bf16[2,128,32], index: 5, kind: input, shape index: {}]   ;;  %s4063_s6 = inlined_call_operand.vmem [shape: f32[18,128], index: 6, kind: input, shape index: {}]   ;;  %s4064_s7 = inlined_call_operand.hbm [shape: f32[16,32], index: 7, kind: output, shape index: {}]  }
   0x1   :  { %v3264_v0 = vld [vmem:[%s4059_s2] sm:$0xff]   ;;  %2936 = vmatprep.subr.bf16.mxu1 %v3400_v1  ;;  %v3265_v2 = vld [vmem:[%s4059_s2 + $0x8] sm:$0xff]   ;;  %2962 = vmatprep.subr.bf16.mxu0 %v3400_v1 }
   0x2   :  { %2937 = vmatpush3.bf16.msra.mxu1 %v3264_v0  ;;  %2940 = vmatprep.mubr.msk.bf16.mxu1 %vm3401_vm0, %v3400_v1  ;;  %v28_v3 = vld [vmem:[%s4057_s0] sm:$0xff]  ;;  %v29_v4 = vld [vmem:[%s4057_s0 + $0x8] sm:$0xff] }
   0x3   :  { %v30_v5 = vld [vmem:[%s4058_s1] sm:$0xff]  ;;  %2938 = vmatprep.subr.bf16.mxu1 %v3400_v1  ;;  %v31_v6 = vld [vmem:[%s4058_s1 + $0x8] sm:$0xff]  ;;  %2964 = vmatprep.mubr.msk.bf16.mxu0 %vm3401_vm0, %v3400_v1 }
   0x4   :  { %v3481_v7 = vadd.f32 %v30_v5, %v28_v3  ;;  %v3485_v8 = vadd.f32 %v31_v6, %v29_v4 }
   0x6   :  { %2939 = vmatpush3.bf16.msra.mxu1 %v3265_v2  ;;  %v42_v9 = vpack.c.bf16 %v3485_v8, %v3481_v7 }
   0x7   :  { %2944 = vmatprep.subr.bf16.mxu1 %v3400_v1 }
   0x9   :  { %2941 = vmatmul.mubr.msk.bf16.vlgmr.msra.gmra.mrb[0].mxu1 %vm63_vm1, %v42_v9 }
   0xa   :  { %2946 = vmatprep.mubr.msk.bf16.mxu1 %vm3401_vm0, %v3400_v1 }
   0xb   :  { %12 = vsyncpa [#allocation3], 0  ;;  %v2724_v10 = vld [vmem:[%s4063_s6] ss:$0 sm:$0xff]  ;;  %s3402_s13 = smov 96   ;;  %vm117_vm2 = vcmask 64512  }
   0xc   :  { %s3403_s14 = smov 64   ;;  %s3404_s15 = smov 88   ;;  %vm242_vm3 = vcmask 1043456   ;;  %vm1022_vm4 = vcmask 130048   ;;  %vm1025_vm5 = vcmask 195584  }
   0xd   :  { %s3405_s16 = smov 120   ;;  %s3406_s17 = smov 56  }
   0xe   :  { %s3407_s18 = smov 80   ;;  %s3408_s19 = smov 112  }
   0xf   :  { %s3409_s20 = smov 48   ;;  %s3410_s21 = smov 72  }
  0x10   :  { %s3411_s22 = smov 104   ;;  %s3412_s23 = smov 40  }
  0x11   :  { %s3413_s24 = smov 8   ;;  %s3414_s25 = smov 16  }
  0x12   :  { %s3415_s30 = smov 24   ;;  %s3416_s1 = smov [#allocation2]  }
  0x13   :  { %s2713_s26 = sshll.u32 %s3416_s1, 4  ;;  %s2714_s26 = int_to_ptr.vmem [resolvable:$true] %s2713_s26 }
  0x14   :  { %p3381_p1 = scmp.lt.s32.totalorder %s2714_s26, %s2714_s26 }
  0xdc   :  { %v101_v11 = vpop.f32.mrb[0].mxu1 }
  0xdd   :  { %v102_v12 = vadd.f32 %v2724_v10, %v101_v11  ;;  %v2942_v13 = vpop.f32.mrb[1].mxu1 }
  0xde   :  { %v104_v14 = vpop.f32.mrb[2].mxu1 }
  0xdf   :  { %v3496_v15 = vpack.c.bf16 %v102_v12, %v102_v12  ;;  %v105_v16 = vadd.f32 %v2724_v10, %v104_v14  ;;  %v2943_v17 = vpop.f32.mrb[3].mxu1  ;;  %v108_v21 = vmul.f32 0.35355338, %v102_v12 }
  0xe1   :  { %115 = vrot.lane.b32.xlu0 %v3496_v15, %s3402_s13  ;;  %v3500_v18 = vpack.c.bf16 %v105_v16, %v105_v16  ;;  %v3506_v23 = vpack.c.bf16 %v108_v21, %v108_v21  ;;  %v109_v25 = vmul.f32 0.35355338, %v105_v16 }
  0xe3   :  { %v3514_v26 = vpack.c.bf16 %v109_v25, %v109_v25 }
  0xe5   :  { %165 = vrot.lane.b32.xlu0 %v3500_v18, %s3402_s13 }
 0x153   :  { %v116_v19 = vpop.permute.xlu0 %115 }
 0x154   :  { %v122_v20 = vsel %vm117_vm2, %v116_v19, 0 }
 0x155   :  { %2945 = vmatpush3.bf16.xpose.msra.mxu1 %v122_v20 }
 0x156   :  { %2950 = vmatprep.subr.bf16.mxu1 %v3400_v1 }
 0x157   :  { %v166_v22 = vpop.permute.xlu0 %165 }
 0x158   :  { %v171_v24 = vsel %vm117_vm2, %v166_v22, 0 }
 0x15c   :  { %2947 = vmatmul.mubr.msk.bf16.vlgmr.msra.gmra.mrb[4].mxu1 %vm117_vm2, %v3506_v23 }
 0x15d   :  { %2951 = vmatpush3.bf16.xpose.msra.mxu1 %v171_v24  ;;  %2952 = vmatprep.mubr.msk.bf16.mxu1 %vm3401_vm0, %v3400_v1 }
 0x15e   :  { %2956 = vmatprep.subr.bf16.mxu1 %v3400_v1 }
 0x164   :  { %2953 = vmatmul.mubr.msk.bf16.vlgmr.msra.gmra.mrb[8].mxu1 %vm117_vm2, %v3514_v26 }
 0x165   :  { %2958 = vmatprep.mubr.msk.bf16.mxu1 %vm3401_vm0, %v3400_v1 }
 0x22f   :  { %v158_v27 = vpop.f32.mrb[4].mxu1 }
 0x230   :  { %v2948_v28 = vpop.f32.mrb[5].mxu1  ;;  %v213_v29 = vsel %vm117_vm2, %v158_v27, -inf }
 0x231   :  { %214 = vmax.xlane.f32.xlu1 %v213_v29  ;;  %v161_v30 = vpop.f32.mrb[6].mxu1 }
 0x232   :  { %v2949_v31 = vpop.f32.mrb[7].mxu1 }
 0x237   :  { %v207_v32 = vpop.f32.mrb[8].mxu1 }
 0x238   :  { %v2954_v33 = vpop.f32.mrb[9].mxu1  ;;  %v216_v34 = vsel %vm117_vm2, %v207_v32, -inf }
 0x239   :  { %217 = vmax.xlane.f32.xlu1 %v216_v34  ;;  %v210_v35 = vpop.f32.mrb[10].mxu1 }
 0x23a   :  { %v2955_v36 = vpop.f32.mrb[11].mxu1 }
 0x24a   :  { %237 = vrot.lane.b32.xlu1 %v3496_v15, %s3403_s14 }
 0x24e   :  { %286 = vrot.lane.b32.xlu1 %v3500_v18, %s3403_s14 }
 0x252   :  { %337 = vrot.lane.b32.xlu1 %v3496_v15, %s3404_s15 }
 0x2be   :  { %v215_v37 = vpop.xlane.xlu1 %214 }
 0x2bf   :  { %v219_v38 = vsub.f32 %v158_v27, %v215_v37 }
 0x2c1   :  { %v221_v39 = vmul.f32 1.442695, %v219_v38 }
 0x2c3   :  { %3292 = vpow2.f32 %v221_v39 }
 0x2c6   :  { %v218_v40 = vpop.xlane.xlu1 %217 }
 0x2c7   :  { %v220_v41 = vsub.f32 %v207_v32, %v218_v40 }
 0x2c9   :  { %v223_v42 = vmul.f32 1.442695, %v220_v41 }
 0x2ca   :  { %v238_v43 = vpop.permute.xlu1 %237 }
 0x2cb   :  { %3294 = vpow2.f32 %v223_v42  ;;  %v244_v44 = vsel %vm242_vm3, %v238_v43, 0 }
 0x2cc   :  { %2957 = vmatpush3.bf16.msra.mxu1 %v244_v44 }
 0x2cd   :  { %v3293_v45 = vpop.eup %3292  ;;  %2968 = vmatprep.subr.bf16.mxu1 %v3400_v1 }
 0x2ce   :  { %v287_v46 = vpop.permute.xlu1 %286  ;;  %v225_v47 = vsel %vm117_vm2, %v3293_v45, 0.0 }
 0x2cf   :  { %226 = vadd.xlane.f32.xlu0 %v225_v47  ;;  %v292_v48 = vsel %vm242_vm3, %v287_v46, 0 }
 0x2d0   :  { %2963 = vmatpush3.bf16.msra.mxu0 %v292_v48 }
 0x2d1   :  { %2974 = vmatprep.subr.bf16.mxu0 %v3400_v1 }
 0x2d2   :  { %v338_v52 = vpop.permute.xlu1 %337 }
 0x2d3   :  { %v343_v57 = vsel %vm117_vm2, %v338_v52, 0 }
 0x2d5   :  { %v3295_v49 = vpop.eup %3294 }
 0x2d6   :  { %v228_v50 = vsel %vm117_vm2, %v3295_v49, 0.0 }
 0x2d7   :  { %229 = vadd.xlane.f32.xlu1 %v228_v50 }
 0x2e5   :  { %335 = vrot.lane.b32.xlu0 %v3506_v23, %s3405_s16 }
 0x2e8   :  { %388 = vrot.lane.b32.xlu1 %v3500_v18, %s3404_s15 }
 0x2ec   :  { %386 = vrot.lane.b32.xlu1 %v3514_v26, %s3405_s16 }
 0x35c   :  { %v227_v51 = vpop.xlane.xlu0 %226 }
 0x35d   :  { %3296 = vrcp.f32 %v227_v51 }
 0x360   :  { %v336_v62 = vpop.permute.xlu0 %335 }
 0x364   :  { %v230_v53 = vpop.xlane.xlu1 %229 }
 0x365   :  { %3298 = vrcp.f32 %v230_v53 }
 0x367   :  { %v3297_v54 = vpop.eup %3296 }
 0x368   :  { %v233_v55 = vmul.f32 %v3297_v54, %v3293_v45  ;;  %v389_v60 = vpop.permute.xlu1 %388 }
 0x369   :  { %v394_v63 = vsel %vm117_vm2, %v389_v60, 0 }
 0x36a   :  { %v235_v56 = vpack.c.bf16 %v233_v55, %v233_v55 }
 0x36c   :  { %2959 = vmatmul.mubr.msk.bf16.vlgmr.msra.gmra.mrb[12].mxu1 %vm117_vm2, %v235_v56  ;;  %v387_v0 = vpop.permute.xlu1 %386 }
 0x36d   :  { %2969 = vmatpush3.bf16.xpose.msra.mxu1 %v343_v57  ;;  %2970 = vmatprep.mubr.msk.bf16.mxu1 %vm3401_vm0, %v3400_v1 }
 0x36e   :  { %2980 = vmatprep.subr.bf16.mxu1 %v3400_v1 }
 0x36f   :  { %v3299_v58 = vpop.eup %3298 }
 0x370   :  { %v234_v59 = vmul.f32 %v3299_v58, %v3295_v49 }
 0x372   :  { %v236_v61 = vpack.c.bf16 %v234_v59, %v234_v59 }
 0x374   :  { %2965 = vmatmul.mubr.msk.bf16.vlgmr.msra.gmra.mrb[0].mxu0 %vm117_vm2, %v236_v61  ;;  %2971 = vmatmul.mubr.msk.bf16.vlgmr.msra.gmra.mrb[16].mxu1 %vm117_vm2, %v336_v62 }
 0x375   :  { %2975 = vmatpush3.bf16.xpose.msra.mxu0 %v394_v63  ;;  %2976 = vmatprep.mubr.msk.bf16.mxu0 %vm3401_vm0, %v3400_v1 }
 0x376   :  { %2986 = vmatprep.subr.bf16.mxu0 %v3400_v1  ;;  %2982 = vmatprep.mubr.msk.bf16.mxu1 %vm3401_vm0, %v3400_v1 }
 0x37c   :  { %2977 = vmatmul.mubr.msk.bf16.vlgmr.msra.gmra.mrb[4].mxu0 %vm117_vm2, %v387_v0 }
 0x37d   :  { %2988 = vmatprep.mubr.msk.bf16.mxu0 %vm3401_vm0, %v3400_v1 }
 0x43f   :  { %v3556_v2 = vpop.f32.mrb[12].mxu1 }
 0x440   :  { %v2960_v3 = vpop.f32.mrb[13].mxu1 }
 0x441   :  { %v283_v4 = vpop.f32.mrb[14].mxu1 }
 0x442   :  { %v2961_v5 = vpop.f32.mrb[15].mxu1 }
 0x447   :  { %v3558_v6 = vpop.f32.mrb[0].mxu0  ;;  %v379_v9 = vpop.f32.mrb[16].mxu1 }
 0x448   :  { %v2966_v10 = vpop.f32.mrb[1].mxu0  ;;  %v2972_v11 = vpop.f32.mrb[17].mxu1  ;;  %v436_v12 = vsel %vm117_vm2, %v379_v9, -inf }
 0x449   :  { %v331_v13 = vpop.f32.mrb[2].mxu0  ;;  %437 = vmax.xlane.f32.xlu1 %v436_v12  ;;  %v382_v14 = vpop.f32.mrb[18].mxu1 }
 0x44a   :  { %v2967_v16 = vpop.f32.mrb[3].mxu0  ;;  %v2973_v17 = vpop.f32.mrb[19].mxu1 }
 0x44f   :  { %v430_v19 = vpop.f32.mrb[4].mxu0 }
 0x450   :  { %v2978_v20 = vpop.f32.mrb[5].mxu0  ;;  %v439_v21 = vsel %vm117_vm2, %v430_v19, -inf }
 0x451   :  { %440 = vmax.xlane.f32.xlu0 %v439_v21  ;;  %v433_v22 = vpop.f32.mrb[6].mxu0 }
 0x452   :  { %v2979_v24 = vpop.f32.mrb[7].mxu0 }
 0x45a   :  { %460 = vrot.lane.b32.xlu1 %v3496_v15, %s3406_s17 }
 0x45e   :  { %558 = vrot.lane.b32.xlu1 %v3496_v15, %s3407_s18 }
 0x467   :  { %508 = vrot.lane.b32.xlu0 %v3500_v18, %s3406_s17 }
 0x46b   :  { %556 = vrot.lane.b32.xlu0 %v3506_v23, %s3408_s19 }
 0x4d6   :  { %v438_v25 = vpop.xlane.xlu1 %437 }
 0x4d7   :  { %v442_v27 = vsub.f32 %v379_v9, %v438_v25 }
 0x4d9   :  { %v444_v28 = vmul.f32 1.442695, %v442_v27 }
 0x4da   :  { %v461_v29 = vpop.permute.xlu1 %460 }
 0x4db   :  { %3300 = vpow2.f32 %v444_v28  ;;  %v466_v30 = vsel %vm242_vm3, %v461_v29, 0 }
 0x4dc   :  { %2981 = vmatpush3.bf16.msra.mxu1 %v466_v30 }
 0x4dd   :  { %2992 = vmatprep.subr.bf16.mxu1 %v3400_v1 }
 0x4de   :  { %v441_v31 = vpop.xlane.xlu0 %440  ;;  %v559_v40 = vpop.permute.xlu1 %558 }
 0x4df   :  { %v443_v32 = vsub.f32 %v430_v19, %v441_v31  ;;  %v564_v46 = vsel %vm117_vm2, %v559_v40, 0 }
 0x4e1   :  { %v446_v33 = vmul.f32 1.442695, %v443_v32 }
 0x4e2   :  { %v509_v34 = vpop.permute.xlu0 %508 }
 0x4e3   :  { %3302 = vpow2.f32 %v446_v33  ;;  %v514_v35 = vsel %vm242_vm3, %v509_v34, 0 }
 0x4e4   :  { %2987 = vmatpush3.bf16.msra.mxu0 %v514_v35 }
 0x4e5   :  { %v3301_v36 = vpop.eup %3300  ;;  %2998 = vmatprep.subr.bf16.mxu0 %v3400_v1 }
 0x4e6   :  { %v448_v37 = vsel %vm117_vm2, %v3301_v36, 0.0  ;;  %v557_v51 = vpop.permute.xlu0 %556 }
 0x4e7   :  { %449 = vadd.xlane.f32.xlu1 %v448_v37 }
 0x4ed   :  { %v3303_v38 = vpop.eup %3302 }
 0x4ee   :  { %v451_v39 = vsel %vm117_vm2, %v3303_v38, 0.0 }
 0x4ef   :  { %452 = vadd.xlane.f32.xlu1 %v451_v39 }
 0x500   :  { %608 = vrot.lane.b32.xlu1 %v3500_v18, %s3407_s18 }
 0x504   :  { %606 = vrot.lane.b32.xlu1 %v3514_v26, %s3408_s19 }
 0x574   :  { %v450_v41 = vpop.xlane.xlu1 %449 }
 0x575   :  { %3304 = vrcp.f32 %v450_v41 }
 0x57c   :  { %v453_v42 = vpop.xlane.xlu1 %452 }
 0x57d   :  { %3306 = vrcp.f32 %v453_v42 }
 0x57f   :  { %v3305_v43 = vpop.eup %3304 }
 0x580   :  { %v456_v44 = vmul.f32 %v3305_v43, %v3301_v36  ;;  %v609_v49 = vpop.permute.xlu1 %608 }
 0x581   :  { %v614_v52 = vsel %vm117_vm2, %v609_v49, 0 }
 0x582   :  { %v458_v45 = vpack.c.bf16 %v456_v44, %v456_v44 }
 0x584   :  { %2983 = vmatmul.mubr.msk.bf16.vlgmr.msra.gmra.mrb[20].mxu1 %vm117_vm2, %v458_v45  ;;  %v607_v53 = vpop.permute.xlu1 %606 }
 0x585   :  { %2993 = vmatpush3.bf16.xpose.msra.mxu1 %v564_v46  ;;  %2994 = vmatprep.mubr.msk.bf16.mxu1 %vm3401_vm0, %v3400_v1 }
 0x586   :  { %3004 = vmatprep.subr.bf16.mxu1 %v3400_v1 }
 0x587   :  { %v3307_v47 = vpop.eup %3306 }
 0x588   :  { %v457_v48 = vmul.f32 %v3307_v47, %v3303_v38 }
 0x58a   :  { %v459_v50 = vpack.c.bf16 %v457_v48, %v457_v48 }
 0x58c   :  { %2989 = vmatmul.mubr.msk.bf16.vlgmr.msra.gmra.mrb[8].mxu0 %vm117_vm2, %v459_v50  ;;  %2995 = vmatmul.mubr.msk.bf16.vlgmr.msra.gmra.mrb[24].mxu1 %vm117_vm2, %v557_v51 }
 0x58d   :  { %2999 = vmatpush3.bf16.xpose.msra.mxu0 %v614_v52  ;;  %3000 = vmatprep.mubr.msk.bf16.mxu0 %vm3401_vm0, %v3400_v1 }
 0x58e   :  { %3010 = vmatprep.subr.bf16.mxu0 %v3400_v1  ;;  %3006 = vmatprep.mubr.msk.bf16.mxu1 %vm3401_vm0, %v3400_v1 }
 0x594   :  { %3001 = vmatmul.mubr.msk.bf16.vlgmr.msra.gmra.mrb[12].mxu0 %vm117_vm2, %v607_v53 }
 0x595   :  { %3012 = vmatprep.mubr.msk.bf16.mxu0 %vm3401_vm0, %v3400_v1 }
 0x657   :  { %v3596_v54 = vpop.f32.mrb[20].mxu1 }
 0x658   :  { %v2984_v55 = vpop.f32.mrb[21].mxu1 }
 0x659   :  { %v505_v56 = vpop.f32.mrb[22].mxu1 }
 0x65a   :  { %v2985_v57 = vpop.f32.mrb[23].mxu1 }
 0x65f   :  { %v3598_v58 = vpop.f32.mrb[8].mxu0  ;;  %v600_v59 = vpop.f32.mrb[24].mxu1 }
 0x660   :  { %v3234_v60 = vpack.i.bf16 %v3598_v58, %v3596_v54  ;;  %v2990_v61 = vpop.f32.mrb[9].mxu0  ;;  %v2996_v62 = vpop.f32.mrb[25].mxu1  ;;  %v656_v63 = vsel %vm117_vm2, %v600_v59, -inf }
 0x661   :  { %v553_v0 = vpop.f32.mrb[10].mxu0  ;;  %657 = vmax.xlane.f32.xlu0 %v656_v63  ;;  %v603_v3 = vpop.f32.mrb[26].mxu1 }
 0x662   :  { %v2991_v4 = vpop.f32.mrb[11].mxu0  ;;  %v2997_v5 = vpop.f32.mrb[27].mxu1 }
 0x667   :  { %v650_v9 = vpop.f32.mrb[12].mxu0 }
 0x668   :  { %v3002_v10 = vpop.f32.mrb[13].mxu0  ;;  %v659_v11 = vsel %vm117_vm2, %v650_v9, -inf }
 0x669   :  { %660 = vmax.xlane.f32.xlu1 %v659_v11  ;;  %v653_v12 = vpop.f32.mrb[14].mxu0 }
 0x66a   :  { %v3003_v13 = vpop.f32.mrb[15].mxu0 }
 0x67a   :  { %680 = vrot.lane.b32.xlu1 %v3496_v15, %s3409_s20 }
 0x67e   :  { %778 = vrot.lane.b32.xlu1 %v3496_v15, %s3410_s21 }
 0x682   :  { %828 = vrot.lane.b32.xlu1 %v3500_v18, %s3410_s21 }
 0x686   :  { %826 = vrot.lane.b32.xlu1 %v3514_v26, %s3411_s22 }
 0x6ee   :  { %v658_v14 = vpop.xlane.xlu0 %657 }
 0x6ef   :  { %v662_v16 = vsub.f32 %v600_v59, %v658_v14 }
 0x6f1   :  { %v664_v17 = vmul.f32 1.442695, %v662_v16 }
 0x6f3   :  { %3308 = vpow2.f32 %v664_v17 }
 0x6f6   :  { %v661_v19 = vpop.xlane.xlu1 %660 }
 0x6f7   :  { %v663_v20 = vsub.f32 %v650_v9, %v661_v19 }
 0x6f9   :  { %v666_v21 = vmul.f32 1.442695, %v663_v20 }
 0x6fa   :  { %v681_v22 = vpop.permute.xlu1 %680 }
 0x6fb   :  { %3310 = vpow2.f32 %v666_v21  ;;  %v686_v24 = vsel %vm242_vm3, %v681_v22, 0 }
 0x6fc   :  { %3005 = vmatpush3.bf16.msra.mxu1 %v686_v24 }
 0x6fd   :  { %v3309_v25 = vpop.eup %3308  ;;  %3016 = vmatprep.subr.bf16.mxu1 %v3400_v1 }
 0x6fe   :  { %v668_v27 = vsel %vm117_vm2, %v3309_v25, 0.0  ;;  %v779_v34 = vpop.permute.xlu1 %778 }
 0x6ff   :  { %669 = vadd.xlane.f32.xlu0 %v668_v27  ;;  %v784_v37 = vsel %vm117_vm2, %v779_v34, 0 }
 0x702   :  { %v829_v39 = vpop.permute.xlu1 %828 }
 0x703   :  { %v834_v42 = vsel %vm117_vm2, %v829_v39, 0 }
 0x705   :  { %v3311_v28 = vpop.eup %3310 }
 0x706   :  { %v671_v26 = vsel %vm117_vm2, %v3311_v28, 0.0  ;;  %v827_v43 = vpop.permute.xlu1 %826 }
 0x707   :  { %672 = vadd.xlane.f32.xlu0 %v671_v26  ;;  %v3267_v26 = vld [vmem:[%s4060_s3 + $0x8] sm:$0xff]  }
 0x71d   :  { %728 = vrot.lane.b32.xlu0 %v3500_v18, %s3409_s20 }
 0x721   :  { %776 = vrot.lane.b32.xlu0 %v3506_v23, %s3411_s22 }
 0x78c   :  { %v670_v29 = vpop.xlane.xlu0 %669 }
 0x78d   :  { %3312 = vrcp.f32 %v670_v29 }
 0x794   :  { %v673_v30 = vpop.xlane.xlu0 %672 }
 0x795   :  { %3314 = vrcp.f32 %v673_v30 }
 0x797   :  { %v3313_v31 = vpop.eup %3312 }
 0x798   :  { %v676_v32 = vmul.f32 %v3313_v31, %v3309_v25  ;;  %v729_v33 = vpop.permute.xlu0 %728 }
 0x799   :  { %v734_v35 = vsel %vm242_vm3, %v729_v33, 0 }
 0x79a   :  { %3011 = vmatpush3.bf16.msra.mxu0 %v734_v35  ;;  %v678_v36 = vpack.c.bf16 %v676_v32, %v676_v32 }
 0x79b   :  { %3022 = vmatprep.subr.bf16.mxu0 %v3400_v1 }
 0x79c   :  { %3007 = vmatmul.mubr.msk.bf16.vlgmr.msra.gmra.mrb[28].mxu1 %vm117_vm2, %v678_v36  ;;  %v777_v41 = vpop.permute.xlu0 %776 }
 0x79d   :  { %3017 = vmatpush3.bf16.xpose.msra.mxu1 %v784_v37  ;;  %3018 = vmatprep.mubr.msk.bf16.mxu1 %vm3401_vm0, %v3400_v1 }
 0x79e   :  { %3028 = vmatprep.subr.bf16.mxu1 %v3400_v1 }
 0x79f   :  { %v3315_v23 = vpop.eup %3314 }
 0x7a0   :  { %v677_v38 = vmul.f32 %v3315_v23, %v3311_v28  ;;  %v3266_v28 = vld [vmem:[%s4060_s3] sm:$0xff]  }
 0x7a2   :  { %v679_v40 = vpack.c.bf16 %v677_v38, %v677_v38 }
 0x7a4   :  { %3013 = vmatmul.mubr.msk.bf16.vlgmr.msra.gmra.mrb[16].mxu0 %vm117_vm2, %v679_v40  ;;  %3019 = vmatmul.mubr.msk.bf16.vlgmr.msra.gmra.mrb[32].mxu1 %vm117_vm2, %v777_v41 }
 0x7a5   :  { %3023 = vmatpush3.bf16.xpose.msra.mxu0 %v834_v42  ;;  %3024 = vmatprep.mubr.msk.bf16.mxu0 %vm3401_vm0, %v3400_v1 }
 0x7a6   :  { %3034 = vmatprep.subr.bf16.mxu0 %v3400_v1  ;;  %3030 = vmatprep.mubr.msk.bf16.mxu1 %vm3401_vm0, %v3400_v1 }
 0x7ac   :  { %3025 = vmatmul.mubr.msk.bf16.vlgmr.msra.gmra.mrb[20].mxu0 %vm117_vm2, %v827_v43 }
 0x7ad   :  { %3036 = vmatprep.mubr.msk.bf16.mxu0 %vm3401_vm0, %v3400_v1 }
 0x86f   :  { %v722_v44 = vpop.f32.mrb[28].mxu1 }
 0x870   :  { %v3008_v45 = vpop.f32.mrb[29].mxu1 }
 0x871   :  { %v725_v46 = vpop.f32.mrb[30].mxu1 }
 0x872   :  { %v3009_v47 = vpop.f32.mrb[31].mxu1 }
 0x877   :  { %v770_v48 = vpop.f32.mrb[16].mxu0  ;;  %v820_v49 = vpop.f32.mrb[32].mxu1 }
 0x878   :  { %v3239_v50 = vpack.i.bf16 %v770_v48, %v722_v44  ;;  %v3014_v51 = vpop.f32.mrb[17].mxu0  ;;  %v3020_v52 = vpop.f32.mrb[33].mxu1  ;;  %v876_v53 = vsel %vm117_vm2, %v820_v49, -inf }
 0x879   :  { %v773_v55 = vpop.f32.mrb[18].mxu0  ;;  %877 = vmax.xlane.f32.xlu0 %v876_v53  ;;  %v823_v56 = vpop.f32.mrb[34].mxu1 }
 0x87a   :  { %v3015_v57 = vpop.f32.mrb[19].mxu0  ;;  %v3021_v59 = vpop.f32.mrb[35].mxu1 }
 0x87f   :  { %v870_v61 = vpop.f32.mrb[20].mxu0 }
 0x880   :  { %v3026_v62 = vpop.f32.mrb[21].mxu0  ;;  %v879_v63 = vsel %vm117_vm2, %v870_v61, -inf }
 0x881   :  { %880 = vmax.xlane.f32.xlu1 %v879_v63  ;;  %v873_v0 = vpop.f32.mrb[22].mxu0 }
 0x882   :  { %v3027_v3 = vpop.f32.mrb[23].mxu0 }
 0x892   :  { %900 = vrot.lane.b32.xlu1 %v3496_v15, %s3412_s23 }
 0x896   :  { %3235 = vrot.lane.b32.xlu1 %v3234_v60, %s3413_s24 }
 0x89a   :  { %3240 = vrot.lane.b32.xlu1 %v3239_v50, %s3414_s25 }
 0x906   :  { %v878_v4 = vpop.xlane.xlu0 %877 }
 0x907   :  { %v882_v5 = vsub.f32 %v820_v49, %v878_v4 }
 0x909   :  { %v884_v9 = vmul.f32 1.442695, %v882_v5 }
 0x90b   :  { %3316 = vpow2.f32 %v884_v9 }
 0x90e   :  { %v881_v10 = vpop.xlane.xlu1 %880 }
 0x90f   :  { %v883_v11 = vsub.f32 %v870_v61, %v881_v10 }
 0x911   :  { %v886_v12 = vmul.f32 1.442695, %v883_v11 }
 0x912   :  { %v901_v13 = vpop.permute.xlu1 %900 }
 0x913   :  { %3318 = vpow2.f32 %v886_v12  ;;  %v906_v15 = vsel %vm242_vm3, %v901_v13, 0 }
 0x914   :  { %3029 = vmatpush3.bf16.msra.mxu1 %v906_v15 }
 0x915   :  { %v3317_v14 = vpop.eup %3316  ;;  %3040 = vmatprep.subr.bf16.mxu1 %v3400_v1 }
 0x916   :  { %v888_v54 = vsel %vm117_vm2, %v3317_v14, 0.0  ;;  %v3236_v23 = vpop.permute.xlu1 %3235 }
 0x917   :  { %889 = vadd.xlane.f32.xlu0 %v888_v54  ;;  %v3238_v39 = vunpack.i.h.bf16 %v3236_v23  ;;  %v3237_v40 = vunpack.i.l.bf16 %v3236_v23  ;;  %v3270_v54 = vld [vmem:[%s4062_s5] sm:$0xff]   ;;  %v3277_v23 = vld [vmem:[%s4062_s5 + $0x38] sm:$0xff]  }
 0x919   :  { %v1021_v44 = vsel %vm117_vm2, %v3558_v6, %v3238_v39  ;;  %v1020_v45 = vsel %vm117_vm2, %v3556_v2, %v3237_v40  ;;  %v2744_v2 = vld [vmem:[%s4063_s6 + $0x2] ss:$0 sm:$0xff] }
 0x91a   :  { %v3241_v38 = vpop.permute.xlu1 %3240 }
 0x91b   :  { %v3243_v41 = vunpack.i.h.bf16 %v3241_v38  ;;  %v3242_v42 = vunpack.i.l.bf16 %v3241_v38  ;;  %v2750_v38 = vld [vmem:[%s4063_s6 + $0x1] ss:$0 sm:$0xff] }
 0x91d   :  { %v3319_v58 = vpop.eup %3318  ;;  %v1024_v48 = vsel %vm1022_vm4, %v1021_v44, %v3243_v41  ;;  %v1023_v49 = vsel %vm1022_vm4, %v1020_v45, %v3242_v42 }
 0x91e   :  { %v891_v60 = vsel %vm117_vm2, %v3319_v58, 0.0 }
 0x91f   :  { %892 = vadd.xlane.f32.xlu0 %v891_v60  ;;  %v3272_v60 = vld [vmem:[%s4062_s5 + $0x10] sm:$0xff]  }
 0x935   :  { %948 = vrot.lane.b32.xlu0 %v3500_v18, %s3412_s23 }
 0x9a4   :  { %v890_v16 = vpop.xlane.xlu0 %889 }
 0x9a5   :  { %3320 = vrcp.f32 %v890_v16  ;;  %v3273_v16 = vld [vmem:[%s4062_s5 + $0x18] sm:$0xff]  }
 0x9ac   :  { %v893_v17 = vpop.xlane.xlu0 %892 }
 0x9ad   :  { %3322 = vrcp.f32 %v893_v17  ;;  %v3274_v17 = vld [vmem:[%s4062_s5 + $0x20] sm:$0xff]  }
 0x9af   :  { %v3321_v19 = vpop.eup %3320 }
 0x9b0   :  { %v896_v20 = vmul.f32 %v3321_v19, %v3317_v14  ;;  %v949_v21 = vpop.permute.xlu0 %948  ;;  %v3269_v14 = vld [vmem:[%s4061_s4 + $0x8] sm:$0xff]  }
 0x9b1   :  { %v954_v22 = vsel %vm242_vm3, %v949_v21, 0  ;;  %v3275_v19 = vld [vmem:[%s4062_s5 + $0x28] sm:$0xff]  }
 0x9b2   :  { %3035 = vmatpush3.bf16.msra.mxu0 %v954_v22  ;;  %v898_v24 = vpack.c.bf16 %v896_v20, %v896_v20 }
 0x9b3   :  { %3048 = vmatprep.subr.bf16.mxu0 %v3400_v1 }
 0x9b4   :  { %3031 = vmatmul.mubr.msk.bf16.vlgmr.msra.gmra.mrb[36].mxu1 %vm117_vm2, %v898_v24 }
 0x9b5   :  { %3044 = vmatprep.mubr.msk.bf16.mxu1 %vm3401_vm0, %v3400_v1  ;;  %3041 = vmatpush3.bf16.msra.mxu1 %v3266_v28  ;;  %v2748_v28 = vld [vmem:[%s4063_s6 + $0x4] ss:$0 sm:$0xff] }
 0x9b6   :  { %3042 = vmatprep.subr.bf16.mxu1 %v3400_v1 }
 0x9b7   :  { %v3323_v25 = vpop.eup %3322 }
 0x9b8   :  { %v897_v18 = vmul.f32 %v3323_v25, %v3319_v58  ;;  %v3271_v58 = vld [vmem:[%s4062_s5 + $0x8] sm:$0xff]  }
 0x9b9   :  { %3043 = vmatpush3.bf16.msra.mxu1 %v3267_v26 }
 0x9ba   :  { %v899_v27 = vpack.c.bf16 %v897_v18, %v897_v18  ;;  %3056 = vmatprep.subr.bf16.mxu1 %v3400_v1 }
 0x9bc   :  { %3037 = vmatmul.mubr.msk.bf16.vlgmr.msra.gmra.mrb[24].mxu0 %vm117_vm2, %v899_v27 }
 0x9bd   :  { %3052 = vmatprep.mubr.msk.bf16.mxu0 %vm3401_vm0, %v3400_v1 }
 0xa87   :  { %v942_v29 = vpop.f32.mrb[36].mxu1 }
 0xa88   :  { %v3032_v30 = vpop.f32.mrb[37].mxu1 }
 0xa89   :  { %v945_v31 = vpop.f32.mrb[38].mxu1 }
 0xa8a   :  { %v3033_v32 = vpop.f32.mrb[39].mxu1 }
 0xa8b   :  { %v2749_v32 = vld [vmem:[%s4063_s6 + $0x5] ss:$0 sm:$0xff] }
 0xa8f   :  { %v990_v33 = vpop.f32.mrb[24].mxu0 }
 0xa90   :  { %v3244_v34 = vpack.i.bf16 %v990_v33, %v942_v29  ;;  %v3038_v35 = vpop.f32.mrb[25].mxu0 }
 0xa91   :  { %v993_v36 = vpop.f32.mrb[26].mxu0 }
 0xa92   :  { %v3039_v37 = vpop.f32.mrb[27].mxu0  ;;  %3245 = vrot.lane.b32.xlu0 %v3244_v34, %s3415_s30 }
 0xa93   :  { %v3276_v37 = vld [vmem:[%s4062_s5 + $0x30] sm:$0xff]  }
 0xb04   :  { %v3246_v43 = vpop.permute.xlu0 %3245 }
 0xb05   :  { %v3248_v46 = vunpack.i.h.bf16 %v3246_v43  ;;  %v3247_v47 = vunpack.i.l.bf16 %v3246_v43 }
 0xb07   :  { %v1027_v50 = vsel %vm1025_vm5, %v1024_v48, %v3248_v46  ;;  %v1026_v51 = vsel %vm1025_vm5, %v1023_v49, %v3247_v47  ;;  %v2754_v48 = vld [vmem:[%s4063_s6 + $0x3] ss:$0 sm:$0xff] }
 0xb08   :  { %v1028_v52 = vpack.c.bf16 %v1027_v50, %v1026_v51 }
 0xb0a   :  { %3045 = vmatmul.mubr.msk.bf16.vlgmr.msra.gmra.mrb[40].mxu1 %vm63_vm1, %v1028_v52 }
 0xb0b   :  { %3072 = vmatprep.mubr.msk.bf16.mxu1 %vm3401_vm0, %v3400_v1  ;;  %3057 = vmatpush3.bf16.msra.mxu1 %v3270_v54 }
 0xb0c   :  { %3058 = vmatprep.subr.bf16.mxu1 %v3400_v1 }
 0xb0f   :  { %3059 = vmatpush3.bf16.msra.mxu1 %v3271_v58 }
 0xb10   :  { %3060 = vmatprep.subr.bf16.mxu1 %v3400_v1 }
 0xb13   :  { %3061 = vmatpush3.bf16.msra.mxu1 %v3272_v60  ;;  %v2763_v60 = vld [vmem:[%s4063_s6 + $0x6] ss:$0 sm:$0xff] }
 0xb14   :  { %3062 = vmatprep.subr.bf16.mxu1 %v3400_v1 }
 0xb17   :  { %3063 = vmatpush3.bf16.msra.mxu1 %v3273_v16 }
 0xb18   :  { %3064 = vmatprep.subr.bf16.mxu1 %v3400_v1 }
 0xb1b   :  { %3065 = vmatpush3.bf16.msra.mxu1 %v3274_v17 }
 0xb1c   :  { %3066 = vmatprep.subr.bf16.mxu1 %v3400_v1 }
 0xb1f   :  { %3067 = vmatpush3.bf16.msra.mxu1 %v3275_v19 }
 0xb20   :  { %3068 = vmatprep.subr.bf16.mxu1 %v3400_v1 }
 0xb23   :  { %3069 = vmatpush3.bf16.msra.mxu1 %v3276_v37 }
 0xb24   :  { %3070 = vmatprep.subr.bf16.mxu1 %v3400_v1 }
 0xb27   :  { %3071 = vmatpush3.bf16.msra.mxu1 %v3277_v23 }
 0xb28   :  { %3102 = vmatprep.subr.bf16.mxu1 %v3400_v1 }
 0xbdd   :  { %v1086_v6 = vpop.f32.mrb[40].mxu1 }
 0xbde   :  { %v1087_v53 = vadd.f32 %v2744_v2, %v1086_v6  ;;  %v3046_v55 = vpop.f32.mrb[41].mxu1 }
 0xbdf   :  { %v1089_v56 = vpop.f32.mrb[42].mxu1 }
 0xbe0   :  { %v1090_v57 = vadd.f32 %v2744_v2, %v1089_v56  ;;  %v3047_v59 = vpop.f32.mrb[43].mxu1  ;;  %v1093_v61 = vadd.f32 %v1087_v53, %v3481_v7 }
 0xbe2   :  { %v1095_v62 = vsel %vm63_vm1, %v1093_v61, 0.0  ;;  %v1094_v63 = vadd.f32 %v1090_v57, %v3485_v8  ;;  %v3268_v8 = vld [vmem:[%s4061_s4] sm:$0xff]  }
 0xbe3   :  { %1096 = vadd.xlane.f32.xlu1 %v1095_v62  ;;  %3049 = vmatpush3.bf16.msra.mxu0 %v3268_v8 }
 0xbe4   :  { %v1098_v0 = vsel %vm63_vm1, %v1094_v63, 0.0  ;;  %3050 = vmatprep.subr.bf16.mxu0 %v3400_v1 }
 0xbe5   :  { %1099 = vadd.xlane.f32.xlu0 %v1098_v0 }
 0xbe7   :  { %3051 = vmatpush3.bf16.msra.mxu0 %v3269_v14 }
 0xbe8   :  { %3076 = vmatprep.subr.bf16.mxu0 %v3400_v1 }
 0xc70   :  { %v1097_v3 = vpop.xlane.xlu1 %1096 }
 0xc71   :  { %v1102_v4 = vmul.f32 0.03125, %v1097_v3 }
 0xc72   :  { %v1100_v5 = vpop.xlane.xlu0 %1099 }
 0xc73   :  { %v1104_v9 = vsub.f32 %v1093_v61, %v1102_v4  ;;  %v1103_v10 = vmul.f32 0.03125, %v1100_v5 }
 0xc75   :  { %v1105_v11 = vsub.f32 %v1094_v63, %v1103_v10  ;;  %v1106_v12 = vmul.f32 %v1104_v9, %v1104_v9 }
 0xc77   :  { %v1108_v13 = vsel %vm63_vm1, %v1106_v12, 0.0  ;;  %v1107_v15 = vmul.f32 %v1105_v11, %v1105_v11  ;;  %v3279_v12 = vld [vmem:[%s4059_s2 + $0x18] sm:$0xff]  }
 0xc78   :  { %1109 = vadd.xlane.f32.xlu0 %v1108_v13 }
 0xc79   :  { %v1111_v7 = vsel %vm63_vm1, %v1107_v15, 0.0 }
 0xc7a   :  { %1112 = vadd.xlane.f32.xlu1 %v1111_v7 }
 0xd05   :  { %v1110_v20 = vpop.xlane.xlu0 %1109 }
 0xd06   :  { %v1114_v21 = vmul.f32 0.03125, %v1110_v20 }
 0xd07   :  { %v1113_v22 = vpop.xlane.xlu1 %1112 }
 0xd08   :  { %v1116_v24 = vadd.f32 1e-05, %v1114_v21  ;;  %v1115_v25 = vmul.f32 0.03125, %v1113_v22  ;;  %v2764_v21 = vld [vmem:[%s4063_s6 + $0x7] ss:$0 sm:$0xff] }
 0xd0a   :  { %3324 = vrsqrt.f32 %v1116_v24  ;;  %v1117_v18 = vadd.f32 1e-05, %v1115_v25 }
 0xd0c   :  { %3326 = vrsqrt.f32 %v1117_v18 }
 0xd14   :  { %v3325_v27 = vpop.eup %3324 }
 0xd15   :  { %v1120_v26 = vmul.f32 %v3325_v27, %v1104_v9  ;;  %v2769_v27 = vld [vmem:[%s4063_s6 + $0x8] ss:$0 sm:$0xff] }
 0xd16   :  { %v3327_v29 = vpop.eup %3326 }
 0xd17   :  { %v1126_v30 = vmul.f32 %v2748_v28, %v1120_v26  ;;  %v1121_v31 = vmul.f32 %v3327_v29, %v1105_v11  ;;  %v3278_v11 = vld [vmem:[%s4059_s2 + $0x10] sm:$0xff]  }
 0xd19   :  { %v1127_v33 = vmul.f32 %v2748_v28, %v1121_v31  ;;  %v1132_v34 = vadd.f32 %v2749_v32, %v1126_v30 }
 0xd1b   :  { %v1133_v35 = vadd.f32 %v2749_v32, %v1127_v33 }
 0xd1d   :  { %v1134_v36 = vpack.c.bf16 %v1133_v35, %v1132_v34 }
 0xd1f   :  { %3053 = vmatmul.mubr.msk.bf16.vlgmr.msra.gmra.mrb[28].mxu0 %vm63_vm1, %v1134_v36 }
 0xd20   :  { %3080 = vmatprep.mubr.msk.bf16.mxu0 %vm3401_vm0, %v3400_v1  ;;  %3077 = vmatpush3.bf16.msra.mxu0 %v3278_v11 }
 0xd21   :  { %3078 = vmatprep.subr.bf16.mxu0 %v3400_v1 }
 0xd24   :  { %3079 = vmatpush3.bf16.msra.mxu0 %v3279_v12 }
 0xd25   :  { %3084 = vmatprep.subr.bf16.mxu0 %v3400_v1 }
 0xdf2   :  { %v1192_v39 = vpop.f32.mrb[28].mxu0 }
 0xdf3   :  { %v1193_v40 = vadd.f32 %v2750_v38, %v1192_v39  ;;  %v3054_v41 = vpop.f32.mrb[29].mxu0 }
 0xdf4   :  { %v1195_v42 = vpop.f32.mrb[30].mxu0 }
 0xdf5   :  { %v1196_v43 = vadd.f32 %v2750_v38, %v1195_v42  ;;  %v3055_v44 = vpop.f32.mrb[31].mxu0  ;;  %v1199_v45 = vmax.f32 %v1193_v40, 0.0 }
 0xdf7   :  { %v1200_v46 = vmax.f32 %v1196_v43, 0.0 }
 0xdf9   :  { %v1201_v47 = vpack.c.bf16 %v1200_v46, %v1199_v45 }
 0xdfb   :  { %3073 = vmatmul.mubr.bf16.vlgmr.msra.gmra.mrb[44].mxu1 %v1201_v47 }
 0xdfc   :  { %3104 = vmatprep.mubr.msk.bf16.mxu1 %vm3401_vm0, %v3400_v1 }
 0xece   :  { %v1304_v49 = vpop.f32.mrb[44].mxu1 }
 0xecf   :  { %v1305_v50 = vadd.f32 %v2754_v48, %v1304_v49  ;;  %v3074_v51 = vpop.f32.mrb[45].mxu1 }
 0xed0   :  { %v1307_v52 = vpop.f32.mrb[46].mxu1 }
 0xed1   :  { %v1308_v2 = vadd.f32 %v2754_v48, %v1307_v52  ;;  %v3075_v6 = vpop.f32.mrb[47].mxu1  ;;  %v1311_v53 = vadd.f32 %v1305_v50, %v1132_v34 }
 0xed3   :  { %v1313_v55 = vsel %vm63_vm1, %v1311_v53, 0.0  ;;  %v1312_v56 = vadd.f32 %v1308_v2, %v1133_v35 }
 0xed4   :  { %1314 = vadd.xlane.f32.xlu0 %v1313_v55 }
 0xed5   :  { %v1316_v57 = vsel %vm63_vm1, %v1312_v56, 0.0 }
 0xed6   :  { %1317 = vadd.xlane.f32.xlu1 %v1316_v57 }
 0xf61   :  { %v1315_v59 = vpop.xlane.xlu0 %1314 }
 0xf62   :  { %v1319_v61 = vmul.f32 0.03125, %v1315_v59 }
 0xf63   :  { %v1318_v62 = vpop.xlane.xlu1 %1317 }
 0xf64   :  { %v1321_v63 = vsub.f32 %v1311_v53, %v1319_v61  ;;  %v1320_v0 = vmul.f32 0.03125, %v1318_v62 }
 0xf66   :  { %v1322_v3 = vsub.f32 %v1312_v56, %v1320_v0  ;;  %v1323_v4 = vmul.f32 %v1321_v63, %v1321_v63 }
 0xf68   :  { %v1325_v5 = vsel %vm63_vm1, %v1323_v4, 0.0  ;;  %v1324_v9 = vmul.f32 %v1322_v3, %v1322_v3 }
 0xf69   :  { %1326 = vadd.xlane.f32.xlu0 %v1325_v5 }
 0xf6a   :  { %v1328_v10 = vsel %vm63_vm1, %v1324_v9, 0.0 }
 0xf6b   :  { %1329 = vadd.xlane.f32.xlu1 %v1328_v10 }
 0xff6   :  { %v1327_v13 = vpop.xlane.xlu0 %1326 }
 0xff7   :  { %v1331_v15 = vmul.f32 0.03125, %v1327_v13 }
 0xff8   :  { %v1330_v7 = vpop.xlane.xlu1 %1329 }
 0xff9   :  { %v1333_v8 = vadd.f32 1e-05, %v1331_v15  ;;  %v1332_v14 = vmul.f32 0.03125, %v1330_v7 }
 0xffb   :  { %3328 = vrsqrt.f32 %v1333_v8  ;;  %v1334_v54 = vadd.f32 1e-05, %v1332_v14 }
 0xffd   :  { %3330 = vrsqrt.f32 %v1334_v54 }
0x1005   :  { %v3329_v58 = vpop.eup %3328 }
0x1006   :  { %v1337_v16 = vmul.f32 %v3329_v58, %v1321_v63 }
0x1007   :  { %v3331_v17 = vpop.eup %3330 }
0x1008   :  { %v1343_v19 = vmul.f32 %v2763_v60, %v1337_v16  ;;  %v1338_v20 = vmul.f32 %v3331_v17, %v1322_v3 }
0x100a   :  { %v1344_v22 = vmul.f32 %v2763_v60, %v1338_v20  ;;  %v3765_v24 = vadd.f32 %v2764_v21, %v1343_v19 }
0x100c   :  { %v3767_v25 = vadd.f32 %v2764_v21, %v1344_v22 }
0x100e   :  { %v1359_v18 = vpack.c.bf16 %v3767_v25, %v3765_v24 }
0x1010   :  { %3081 = vmatmul.mubr.msk.bf16.vlgmr.msra.gmra.mrb[32].mxu0 %vm63_vm1, %v1359_v18 }
0x1011   :  { %3086 = vmatprep.mubr.msk.bf16.mxu0 %vm3401_vm0, %v3400_v1 }
0x10e3   :  { %v1418_v28 = vpop.f32.mrb[32].mxu0 }
0x10e4   :  { %v1419_v26 = vadd.f32 %v2769_v27, %v1418_v28  ;;  %v3082_v29 = vpop.f32.mrb[33].mxu0 }
0x10e5   :  { %v1421_v30 = vpop.f32.mrb[34].mxu0 }
0x10e6   :  { %v3777_v31 = vpack.c.bf16 %v1419_v26, %v1419_v26  ;;  %v1422_v32 = vadd.f32 %v2769_v27, %v1421_v30  ;;  %v3083_v33 = vpop.f32.mrb[35].mxu0  ;;  %v1425_v37 = vmul.f32 0.35355338, %v1419_v26 }
0x10e8   :  { %v3779_v34 = vpack.c.bf16 %v1422_v32, %v1422_v32  ;;  %1432 = vrot.lane.b32.xlu0 %v3777_v31, %s3402_s13  ;;  %v3787_v38 = vpack.c.bf16 %v1425_v37, %v1425_v37  ;;  %v1426_v40 = vmul.f32 0.35355338, %v1422_v32 }
0x10ea   :  { %1481 = vrot.lane.b32.xlu1 %v3779_v34, %s3402_s13  ;;  %v3795_v41 = vpack.c.bf16 %v1426_v40, %v1426_v40 }
0x115a   :  { %v1433_v35 = vpop.permute.xlu0 %1432 }
0x115b   :  { %v1438_v36 = vsel %vm117_vm2, %v1433_v35, 0 }
0x115c   :  { %3085 = vmatpush3.bf16.xpose.msra.mxu0 %v1438_v36  ;;  %v1482_v23 = vpop.permute.xlu1 %1481 }
0x115d   :  { %3090 = vmatprep.subr.bf16.mxu0 %v3400_v1  ;;  %v1487_v39 = vsel %vm117_vm2, %v1482_v23, 0 }
0x1163   :  { %3087 = vmatmul.mubr.msk.bf16.vlgmr.msra.gmra.mrb[36].mxu0 %vm117_vm2, %v3787_v38 }
0x1164   :  { %3091 = vmatpush3.bf16.xpose.msra.mxu0 %v1487_v39  ;;  %3092 = vmatprep.mubr.msk.bf16.mxu0 %vm3401_vm0, %v3400_v1 }
0x1165   :  { %3096 = vmatprep.subr.bf16.mxu0 %v3400_v1 }
0x116b   :  { %3093 = vmatmul.mubr.msk.bf16.vlgmr.msra.gmra.mrb[40].mxu0 %vm117_vm2, %v3795_v41 }
0x116c   :  { %3098 = vmatprep.mubr.msk.bf16.mxu0 %vm3401_vm0, %v3400_v1 }
0x1236   :  { %v1474_v42 = vpop.f32.mrb[36].mxu0 }
0x1237   :  { %v3088_v43 = vpop.f32.mrb[37].mxu0  ;;  %v1529_v44 = vsel %vm117_vm2, %v1474_v42, -inf }
0x1238   :  { %1530 = vmax.xlane.f32.xlu1 %v1529_v44  ;;  %v1477_v45 = vpop.f32.mrb[38].mxu0 }
0x1239   :  { %v3089_v46 = vpop.f32.mrb[39].mxu0 }
0x123e   :  { %v1523_v47 = vpop.f32.mrb[40].mxu0 }
0x123f   :  { %v3094_v48 = vpop.f32.mrb[41].mxu0  ;;  %v1532_v49 = vsel %vm117_vm2, %v1523_v47, -inf }
0x1240   :  { %1533 = vmax.xlane.f32.xlu0 %v1532_v49  ;;  %v1526_v50 = vpop.f32.mrb[42].mxu0 }
0x1241   :  { %v3095_v51 = vpop.f32.mrb[43].mxu0 }
0x1249   :  { %1601 = vrot.lane.b32.xlu1 %v3779_v34, %s3403_s14 }
0x1256   :  { %1553 = vrot.lane.b32.xlu0 %v3777_v31, %s3403_s14 }
0x12c5   :  { %v1531_v52 = vpop.xlane.xlu1 %1530 }
0x12c6   :  { %v1535_v2 = vsub.f32 %v1474_v42, %v1531_v52 }
0x12c8   :  { %v1537_v6 = vmul.f32 1.442695, %v1535_v2 }
0x12c9   :  { %v1602_v53 = vpop.permute.xlu1 %1601 }
0x12ca   :  { %3332 = vpow2.f32 %v1537_v6  ;;  %v1607_v55 = vsel %vm242_vm3, %v1602_v53, 0 }
0x12cb   :  { %3103 = vmatpush3.bf16.msra.mxu1 %v1607_v55 }
0x12cc   :  { %3114 = vmatprep.subr.bf16.mxu1 %v3400_v1 }
0x12cd   :  { %v1534_v56 = vpop.xlane.xlu0 %1533 }
0x12ce   :  { %v1536_v57 = vsub.f32 %v1523_v47, %v1534_v56 }
0x12d0   :  { %v1539_v59 = vmul.f32 1.442695, %v1536_v57 }
0x12d1   :  { %v1554_v61 = vpop.permute.xlu0 %1553 }
0x12d2   :  { %3334 = vpow2.f32 %v1539_v59  ;;  %v1559_v62 = vsel %vm242_vm3, %v1554_v61, 0 }
0x12d3   :  { %3097 = vmatpush3.bf16.msra.mxu0 %v1559_v62 }
0x12d4   :  { %v3333_v63 = vpop.eup %3332  ;;  %3108 = vmatprep.subr.bf16.mxu0 %v3400_v1 }
0x12d5   :  { %v1541_v0 = vsel %vm117_vm2, %v3333_v63, 0.0 }
0x12d6   :  { %1542 = vadd.xlane.f32.xlu0 %v1541_v0 }
0x12dc   :  { %v3335_v3 = vpop.eup %3334 }
0x12dd   :  { %v1544_v4 = vsel %vm117_vm2, %v3335_v3, 0.0 }
0x12de   :  { %1545 = vadd.xlane.f32.xlu1 %v1544_v4 }
0x12ec   :  { %1703 = vrot.lane.b32.xlu0 %v3779_v34, %s3404_s15 }
0x12ef   :  { %1652 = vrot.lane.b32.xlu1 %v3777_v31, %s3404_s15 }
0x12f0   :  { %1701 = vrot.lane.b32.xlu0 %v3795_v41, %s3405_s16 }
0x12f3   :  { %1650 = vrot.lane.b32.xlu1 %v3787_v38, %s3405_s16 }
0x1363   :  { %v1543_v5 = vpop.xlane.xlu0 %1542 }
0x1364   :  { %3336 = vrcp.f32 %v1543_v5 }
0x1367   :  { %v1704_v14 = vpop.permute.xlu0 %1703 }
0x1368   :  { %v1709_v60 = vsel %vm117_vm2, %v1704_v14, 0 }
0x136b   :  { %v1546_v9 = vpop.xlane.xlu1 %1545  ;;  %v1702_v16 = vpop.permute.xlu0 %1701 }
0x136c   :  { %3338 = vrcp.f32 %v1546_v9 }
0x136e   :  { %v3337_v10 = vpop.eup %3336 }
0x136f   :  { %v1549_v11 = vmul.f32 %v3337_v10, %v3333_v63  ;;  %v1653_v12 = vpop.permute.xlu1 %1652 }
0x1370   :  { %v1658_v15 = vsel %vm117_vm2, %v1653_v12, 0 }
0x1371   :  { %v1551_v13 = vpack.c.bf16 %v1549_v11, %v1549_v11 }
0x1373   :  { %3099 = vmatmul.mubr.msk.bf16.vlgmr.msra.gmra.mrb[44].mxu0 %vm117_vm2, %v1551_v13  ;;  %v1651_v58 = vpop.permute.xlu1 %1650 }
0x1374   :  { %3109 = vmatpush3.bf16.xpose.msra.mxu0 %v1658_v15  ;;  %3110 = vmatprep.mubr.msk.bf16.mxu0 %vm3401_vm0, %v3400_v1 }
0x1375   :  { %3120 = vmatprep.subr.bf16.mxu0 %v3400_v1 }
0x1376   :  { %v3339_v7 = vpop.eup %3338 }
0x1377   :  { %v1550_v8 = vmul.f32 %v3339_v7, %v3335_v3 }
0x1379   :  { %v1552_v54 = vpack.c.bf16 %v1550_v8, %v1550_v8 }
0x137b   :  { %3105 = vmatmul.mubr.msk.bf16.vlgmr.msra.gmra.mrb[48].mxu1 %vm117_vm2, %v1552_v54  ;;  %3111 = vmatmul.mubr.msk.bf16.vlgmr.msra.gmra.mrb[48].mxu0 %vm117_vm2, %v1651_v58 }
0x137c   :  { %3115 = vmatpush3.bf16.xpose.msra.mxu1 %v1709_v60  ;;  %3116 = vmatprep.mubr.msk.bf16.mxu1 %vm3401_vm0, %v3400_v1 }
0x137d   :  { %3126 = vmatprep.subr.bf16.mxu1 %v3400_v1  ;;  %3122 = vmatprep.mubr.msk.bf16.mxu0 %vm3401_vm0, %v3400_v1 }
0x1383   :  { %3117 = vmatmul.mubr.msk.bf16.vlgmr.msra.gmra.mrb[52].mxu1 %vm117_vm2, %v1702_v16 }
0x1384   :  { %3128 = vmatprep.mubr.msk.bf16.mxu1 %vm3401_vm0, %v3400_v1 }
0x1446   :  { %v3837_v17 = vpop.f32.mrb[44].mxu0 }
0x1447   :  { %v3100_v19 = vpop.f32.mrb[45].mxu0 }
0x1448   :  { %v1598_v20 = vpop.f32.mrb[46].mxu0 }
0x1449   :  { %v3101_v21 = vpop.f32.mrb[47].mxu0 }
0x144e   :  { %v3839_v22 = vpop.f32.mrb[48].mxu1  ;;  %v1694_v18 = vpop.f32.mrb[48].mxu0 }
0x144f   :  { %v3106_v27 = vpop.f32.mrb[49].mxu1  ;;  %v3112_v28 = vpop.f32.mrb[49].mxu0  ;;  %v1751_v26 = vsel %vm117_vm2, %v1694_v18, -inf }
0x1450   :  { %1752 = vmax.xlane.f32.xlu1 %v1751_v26  ;;  %v1646_v29 = vpop.f32.mrb[50].mxu1  ;;  %v1697_v30 = vpop.f32.mrb[50].mxu0 }
0x1451   :  { %v3107_v32 = vpop.f32.mrb[51].mxu1  ;;  %v3113_v33 = vpop.f32.mrb[51].mxu0 }
0x1456   :  { %v1745_v35 = vpop.f32.mrb[52].mxu1 }
0x1457   :  { %v3118_v36 = vpop.f32.mrb[53].mxu1  ;;  %v1754_v37 = vsel %vm117_vm2, %v1745_v35, -inf }
0x1458   :  { %1755 = vmax.xlane.f32.xlu0 %v1754_v37  ;;  %v1748_v23 = vpop.f32.mrb[54].mxu1 }
0x1459   :  { %v3119_v39 = vpop.f32.mrb[55].mxu1 }
0x1461   :  { %1823 = vrot.lane.b32.xlu1 %v3779_v34, %s3406_s17 }
0x146e   :  { %1775 = vrot.lane.b32.xlu0 %v3777_v31, %s3406_s17 }
0x14dd   :  { %v1753_v40 = vpop.xlane.xlu1 %1752 }
0x14de   :  { %v1757_v42 = vsub.f32 %v1694_v18, %v1753_v40 }
0x14e0   :  { %v1759_v43 = vmul.f32 1.442695, %v1757_v42 }
0x14e1   :  { %v1824_v44 = vpop.permute.xlu1 %1823 }
0x14e2   :  { %3340 = vpow2.f32 %v1759_v43  ;;  %v1829_v45 = vsel %vm242_vm3, %v1824_v44, 0 }
0x14e3   :  { %3127 = vmatpush3.bf16.msra.mxu1 %v1829_v45 }
0x14e4   :  { %3138 = vmatprep.subr.bf16.mxu1 %v3400_v1 }
0x14e5   :  { %v1756_v46 = vpop.xlane.xlu0 %1755 }
0x14e6   :  { %v1758_v47 = vsub.f32 %v1745_v35, %v1756_v46 }
0x14e8   :  { %v1761_v48 = vmul.f32 1.442695, %v1758_v47 }
0x14e9   :  { %v1776_v49 = vpop.permute.xlu0 %1775 }
0x14ea   :  { %3342 = vpow2.f32 %v1761_v48  ;;  %v1781_v50 = vsel %vm242_vm3, %v1776_v49, 0 }
0x14eb   :  { %3121 = vmatpush3.bf16.msra.mxu0 %v1781_v50 }
0x14ec   :  { %v3341_v51 = vpop.eup %3340  ;;  %3132 = vmatprep.subr.bf16.mxu0 %v3400_v1 }
0x14ed   :  { %v1763_v52 = vsel %vm117_vm2, %v3341_v51, 0.0 }
0x14ee   :  { %1764 = vadd.xlane.f32.xlu0 %v1763_v52 }
0x14f4   :  { %v3343_v2 = vpop.eup %3342 }
0x14f5   :  { %v1766_v6 = vsel %vm117_vm2, %v3343_v2, 0.0 }
0x14f6   :  { %1767 = vadd.xlane.f32.xlu1 %v1766_v6 }
0x1504   :  { %1923 = vrot.lane.b32.xlu0 %v3779_v34, %s3407_s18 }
0x1507   :  { %1873 = vrot.lane.b32.xlu1 %v3777_v31, %s3407_s18 }
0x1508   :  { %1921 = vrot.lane.b32.xlu0 %v3795_v41, %s3408_s19 }
0x150b   :  { %1871 = vrot.lane.b32.xlu1 %v3787_v38, %s3408_s19 }
0x157b   :  { %v1765_v53 = vpop.xlane.xlu0 %1764 }
0x157c   :  { %3344 = vrcp.f32 %v1765_v53 }
0x157f   :  { %v1924_v3 = vpop.permute.xlu0 %1923 }
0x1580   :  { %v1929_v9 = vsel %vm117_vm2, %v1924_v3, 0 }
0x1583   :  { %v1768_v55 = vpop.xlane.xlu1 %1767  ;;  %v1922_v10 = vpop.permute.xlu0 %1921 }
0x1584   :  { %3346 = vrcp.f32 %v1768_v55 }
0x1586   :  { %v3345_v56 = vpop.eup %3344 }
0x1587   :  { %v1771_v57 = vmul.f32 %v3345_v56, %v3341_v51  ;;  %v1874_v59 = vpop.permute.xlu1 %1873 }
0x1588   :  { %v1879_v62 = vsel %vm117_vm2, %v1874_v59, 0 }
0x1589   :  { %v1773_v61 = vpack.c.bf16 %v1771_v57, %v1771_v57 }
0x158b   :  { %3123 = vmatmul.mubr.msk.bf16.vlgmr.msra.gmra.mrb[52].mxu0 %vm117_vm2, %v1773_v61  ;;  %v1872_v5 = vpop.permute.xlu1 %1871 }
0x158c   :  { %3133 = vmatpush3.bf16.xpose.msra.mxu0 %v1879_v62  ;;  %3134 = vmatprep.mubr.msk.bf16.mxu0 %vm3401_vm0, %v3400_v1 }
0x158d   :  { %3144 = vmatprep.subr.bf16.mxu0 %v3400_v1 }
0x158e   :  { %v3347_v63 = vpop.eup %3346 }
0x158f   :  { %v1772_v0 = vmul.f32 %v3347_v63, %v3343_v2 }
0x1591   :  { %v1774_v4 = vpack.c.bf16 %v1772_v0, %v1772_v0 }
0x1593   :  { %3129 = vmatmul.mubr.msk.bf16.vlgmr.msra.gmra.mrb[56].mxu1 %vm117_vm2, %v1774_v4  ;;  %3135 = vmatmul.mubr.msk.bf16.vlgmr.msra.gmra.mrb[56].mxu0 %vm117_vm2, %v1872_v5 }
0x1594   :  { %3139 = vmatpush3.bf16.xpose.msra.mxu1 %v1929_v9  ;;  %3140 = vmatprep.mubr.msk.bf16.mxu1 %vm3401_vm0, %v3400_v1 }
0x1595   :  { %3150 = vmatprep.subr.bf16.mxu1 %v3400_v1  ;;  %3146 = vmatprep.mubr.msk.bf16.mxu0 %vm3401_vm0, %v3400_v1 }
0x159b   :  { %3141 = vmatmul.mubr.msk.bf16.vlgmr.msra.gmra.mrb[60].mxu1 %vm117_vm2, %v1922_v10 }
0x159c   :  { %3152 = vmatprep.mubr.msk.bf16.mxu1 %vm3401_vm0, %v3400_v1 }
0x165e   :  { %v3877_v11 = vpop.f32.mrb[52].mxu0 }
0x165f   :  { %v3124_v12 = vpop.f32.mrb[53].mxu0 }
0x1660   :  { %v1820_v13 = vpop.f32.mrb[54].mxu0 }
0x1661   :  { %v3125_v15 = vpop.f32.mrb[55].mxu0 }
0x1666   :  { %v3879_v7 = vpop.f32.mrb[56].mxu1  ;;  %v1915_v8 = vpop.f32.mrb[56].mxu0 }
0x1667   :  { %v3249_v14 = vpack.i.bf16 %v3879_v7, %v3877_v11  ;;  %v3130_v54 = vpop.f32.mrb[57].mxu1  ;;  %v3136_v58 = vpop.f32.mrb[57].mxu0  ;;  %v1971_v60 = vsel %vm117_vm2, %v1915_v8, -inf }
0x1668   :  { %1972 = vmax.xlane.f32.xlu1 %v1971_v60  ;;  %v1868_v16 = vpop.f32.mrb[58].mxu1  ;;  %v1918_v19 = vpop.f32.mrb[58].mxu0 }
0x1669   :  { %v3131_v20 = vpop.f32.mrb[59].mxu1  ;;  %v3137_v21 = vpop.f32.mrb[59].mxu0 }
0x166e   :  { %v1965_v18 = vpop.f32.mrb[60].mxu1 }
0x166f   :  { %v3142_v27 = vpop.f32.mrb[61].mxu1  ;;  %v1974_v28 = vsel %vm117_vm2, %v1965_v18, -inf }
0x1670   :  { %1975 = vmax.xlane.f32.xlu0 %v1974_v28  ;;  %v1968_v26 = vpop.f32.mrb[62].mxu1 }
0x1671   :  { %v3143_v29 = vpop.f32.mrb[63].mxu1 }
0x1679   :  { %2043 = vrot.lane.b32.xlu1 %v3779_v34, %s3409_s20 }
0x1686   :  { %1995 = vrot.lane.b32.xlu0 %v3777_v31, %s3409_s20 }
0x16f5   :  { %v1973_v30 = vpop.xlane.xlu1 %1972 }
0x16f6   :  { %v1977_v32 = vsub.f32 %v1915_v8, %v1973_v30 }
0x16f8   :  { %v1979_v33 = vmul.f32 1.442695, %v1977_v32 }
0x16f9   :  { %v2044_v35 = vpop.permute.xlu1 %2043 }
0x16fa   :  { %3348 = vpow2.f32 %v1979_v33  ;;  %v2049_v36 = vsel %vm242_vm3, %v2044_v35, 0 }
0x16fb   :  { %3151 = vmatpush3.bf16.msra.mxu1 %v2049_v36 }
0x16fc   :  { %3162 = vmatprep.subr.bf16.mxu1 %v3400_v1 }
0x16fd   :  { %v1976_v37 = vpop.xlane.xlu0 %1975 }
0x16fe   :  { %v1978_v23 = vsub.f32 %v1965_v18, %v1976_v37 }
0x1700   :  { %v1981_v39 = vmul.f32 1.442695, %v1978_v23 }
0x1701   :  { %v1996_v40 = vpop.permute.xlu0 %1995 }
0x1702   :  { %3350 = vpow2.f32 %v1981_v39  ;;  %v2001_v42 = vsel %vm242_vm3, %v1996_v40, 0 }
0x1703   :  { %3145 = vmatpush3.bf16.msra.mxu0 %v2001_v42 }
0x1704   :  { %v3349_v43 = vpop.eup %3348  ;;  %3156 = vmatprep.subr.bf16.mxu0 %v3400_v1 }
0x1705   :  { %v1983_v44 = vsel %vm117_vm2, %v3349_v43, 0.0 }
0x1706   :  { %1984 = vadd.xlane.f32.xlu0 %v1983_v44  ;;  %v3281_v44 = vld [vmem:[%s4060_s3 + $0x18] sm:$0xff]  }
0x170c   :  { %v3351_v45 = vpop.eup %3350 }
0x170d   :  { %v1986_v46 = vsel %vm117_vm2, %v3351_v45, 0.0 }
0x170e   :  { %1987 = vadd.xlane.f32.xlu1 %v1986_v46 }
0x171c   :  { %2143 = vrot.lane.b32.xlu0 %v3779_v34, %s3410_s21 }
0x171f   :  { %2093 = vrot.lane.b32.xlu1 %v3777_v31, %s3410_s21 }
0x1720   :  { %2141 = vrot.lane.b32.xlu0 %v3795_v41, %s3411_s22 }
0x1723   :  { %2091 = vrot.lane.b32.xlu1 %v3787_v38, %s3411_s22 }
0x1793   :  { %v1985_v47 = vpop.xlane.xlu0 %1984 }
0x1794   :  { %3352 = vrcp.f32 %v1985_v47 }
0x1797   :  { %v2144_v6 = vpop.permute.xlu0 %2143 }
0x1798   :  { %v2149_v56 = vsel %vm117_vm2, %v2144_v6, 0 }
0x179b   :  { %v1988_v48 = vpop.xlane.xlu1 %1987  ;;  %v2142_v57 = vpop.permute.xlu0 %2141 }
0x179c   :  { %3354 = vrcp.f32 %v1988_v48 }
0x179e   :  { %v3353_v49 = vpop.eup %3352 }
0x179f   :  { %v1991_v50 = vmul.f32 %v3353_v49, %v3349_v43  ;;  %v2094_v51 = vpop.permute.xlu1 %2093  ;;  %v3280_v43 = vld [vmem:[%s4060_s3 + $0x10] sm:$0xff]  }
0x17a0   :  { %v2099_v2 = vsel %vm117_vm2, %v2094_v51, 0 }
0x17a1   :  { %v1993_v52 = vpack.c.bf16 %v1991_v50, %v1991_v50 }
0x17a3   :  { %3147 = vmatmul.mubr.msk.bf16.vlgmr.msra.gmra.mrb[60].mxu0 %vm117_vm2, %v1993_v52  ;;  %v2092_v55 = vpop.permute.xlu1 %2091 }
0x17a4   :  { %3157 = vmatpush3.bf16.xpose.msra.mxu0 %v2099_v2  ;;  %3158 = vmatprep.mubr.msk.bf16.mxu0 %vm3401_vm0, %v3400_v1 }
0x17a5   :  { %3168 = vmatprep.subr.bf16.mxu0 %v3400_v1 }
0x17a6   :  { %v3355_v41 = vpop.eup %3354 }
0x17a7   :  { %v1992_v38 = vmul.f32 %v3355_v41, %v3351_v45 }
0x17a9   :  { %v1994_v53 = vpack.c.bf16 %v1992_v38, %v1992_v38 }
0x17ab   :  { %3153 = vmatmul.mubr.msk.bf16.vlgmr.msra.gmra.mrb[64].mxu1 %vm117_vm2, %v1994_v53  ;;  %3159 = vmatmul.mubr.msk.bf16.vlgmr.msra.gmra.mrb[64].mxu0 %vm117_vm2, %v2092_v55 }
0x17ac   :  { %3163 = vmatpush3.bf16.xpose.msra.mxu1 %v2149_v56  ;;  %3164 = vmatprep.mubr.msk.bf16.mxu1 %vm3401_vm0, %v3400_v1 }
0x17ad   :  { %3174 = vmatprep.subr.bf16.mxu1 %v3400_v1  ;;  %3170 = vmatprep.mubr.msk.bf16.mxu0 %vm3401_vm0, %v3400_v1 }
0x17b3   :  { %3165 = vmatmul.mubr.msk.bf16.vlgmr.msra.gmra.mrb[68].mxu1 %vm117_vm2, %v2142_v57 }
0x17b4   :  { %3176 = vmatprep.mubr.msk.bf16.mxu1 %vm3401_vm0, %v3400_v1 }
0x1876   :  { %v2037_v59 = vpop.f32.mrb[60].mxu0 }
0x1877   :  { %v3148_v61 = vpop.f32.mrb[61].mxu0 }
0x1878   :  { %v2040_v62 = vpop.f32.mrb[62].mxu0 }
0x1879   :  { %v3149_v63 = vpop.f32.mrb[63].mxu0 }
0x187e   :  { %v2085_v0 = vpop.f32.mrb[64].mxu1  ;;  %v2135_v3 = vpop.f32.mrb[64].mxu0 }
0x187f   :  { %v3254_v4 = vpack.i.bf16 %v2085_v0, %v2037_v59  ;;  %v3154_v5 = vpop.f32.mrb[65].mxu1  ;;  %v3160_v9 = vpop.f32.mrb[65].mxu0  ;;  %v2191_v10 = vsel %vm117_vm2, %v2135_v3, -inf }
0x1880   :  { %2192 = vmax.xlane.f32.xlu1 %v2191_v10  ;;  %v2088_v12 = vpop.f32.mrb[66].mxu1  ;;  %v2138_v13 = vpop.f32.mrb[66].mxu0 }
0x1881   :  { %v3155_v15 = vpop.f32.mrb[67].mxu1  ;;  %v3161_v8 = vpop.f32.mrb[67].mxu0 }
0x1886   :  { %v2185_v54 = vpop.f32.mrb[68].mxu1 }
0x1887   :  { %v3166_v58 = vpop.f32.mrb[69].mxu1  ;;  %v2194_v60 = vsel %vm117_vm2, %v2185_v54, -inf }
0x1888   :  { %2195 = vmax.xlane.f32.xlu0 %v2194_v60  ;;  %v2188_v16 = vpop.f32.mrb[70].mxu1 }
0x1889   :  { %v3167_v19 = vpop.f32.mrb[71].mxu1 }
0x190d   :  { %v2193_v20 = vpop.xlane.xlu1 %2192 }
0x190e   :  { %v2197_v21 = vsub.f32 %v2135_v3, %v2193_v20 }
0x1910   :  { %v2199_v18 = vmul.f32 1.442695, %v2197_v21 }
0x1912   :  { %3356 = vpow2.f32 %v2199_v18 }
0x1915   :  { %v2196_v27 = vpop.xlane.xlu0 %2195 }
0x1916   :  { %v2198_v28 = vsub.f32 %v2185_v54, %v2196_v27 }
0x1918   :  { %v2201_v26 = vmul.f32 1.442695, %v2198_v28 }
0x191a   :  { %3358 = vpow2.f32 %v2201_v26 }
0x191c   :  { %v3357_v29 = vpop.eup %3356 }
0x191d   :  { %v2203_v30 = vsel %vm117_vm2, %v3357_v29, 0.0 }
0x191e   :  { %2204 = vadd.xlane.f32.xlu0 %v2203_v30 }
0x1924   :  { %v3359_v32 = vpop.eup %3358 }
0x1925   :  { %v2206_v33 = vsel %vm117_vm2, %v3359_v32, 0.0 }
0x1926   :  { %2207 = vadd.xlane.f32.xlu1 %v2206_v33  ;;  %v3284_v33 = vld [vmem:[%s4062_s5 + $0x40] sm:$0xff]  }
0x1934   :  { %2215 = vrot.lane.b32.xlu0 %v3777_v31, %s3412_s23 }
0x1937   :  { %2263 = vrot.lane.b32.xlu1 %v3779_v34, %s3412_s23 }
0x1938   :  { %3255 = vrot.lane.b32.xlu0 %v3254_v4, %s3414_s25 }
0x193b   :  { %3250 = vrot.lane.b32.xlu1 %v3249_v14, %s3413_s24 }
0x19ab   :  { %v2205_v35 = vpop.xlane.xlu0 %2204 }
0x19ac   :  { %3360 = vrcp.f32 %v2205_v35  ;;  %v3285_v35 = vld [vmem:[%s4062_s5 + $0x48] sm:$0xff]  }
0x19af   :  { %v2216_v36 = vpop.permute.xlu0 %2215 }
0x19b0   :  { %v2221_v37 = vsel %vm242_vm3, %v2216_v36, 0  ;;  %v3286_v36 = vld [vmem:[%s4062_s5 + $0x50] sm:$0xff]  }
0x19b1   :  { %3169 = vmatpush3.bf16.msra.mxu0 %v2221_v37  ;;  %v3287_v37 = vld [vmem:[%s4062_s5 + $0x58] sm:$0xff]  }
0x19b2   :  { %3180 = vmatprep.subr.bf16.mxu0 %v3400_v1 }
0x19b3   :  { %v2208_v23 = vpop.xlane.xlu1 %2207  ;;  %v3256_v53 = vpop.permute.xlu0 %3255 }
0x19b4   :  { %3362 = vrcp.f32 %v2208_v23  ;;  %v3258_v57 = vunpack.i.h.bf16 %v3256_v53  ;;  %v3257_v59 = vunpack.i.l.bf16 %v3256_v53  ;;  %v3288_v23 = vld [vmem:[%s4062_s5 + $0x60] sm:$0xff]  }
0x19b6   :  { %v3361_v31 = vpop.eup %3360 }
0x19b7   :  { %v2211_v39 = vmul.f32 %v3361_v31, %v3357_v29  ;;  %v2264_v34 = vpop.permute.xlu1 %2263  ;;  %v3289_v31 = vld [vmem:[%s4062_s5 + $0x68] sm:$0xff]  }
0x19b8   :  { %v2269_v40 = vsel %vm242_vm3, %v2264_v34, 0 }
0x19b9   :  { %3175 = vmatpush3.bf16.msra.mxu1 %v2269_v40  ;;  %v2213_v42 = vpack.c.bf16 %v2211_v39, %v2211_v39 }
0x19ba   :  { %3188 = vmatprep.subr.bf16.mxu1 %v3400_v1 }
0x19bb   :  { %3171 = vmatmul.mubr.msk.bf16.vlgmr.msra.gmra.mrb[68].mxu0 %vm117_vm2, %v2213_v42  ;;  %v3251_v41 = vpop.permute.xlu1 %3250 }
0x19bc   :  { %3184 = vmatprep.mubr.msk.bf16.mxu0 %vm3401_vm0, %v3400_v1  ;;  %3181 = vmatpush3.bf16.msra.mxu0 %v3280_v43  ;;  %v3253_v38 = vunpack.i.h.bf16 %v3251_v41  ;;  %v3252_v6 = vunpack.i.l.bf16 %v3251_v41  ;;  %v3291_v41 = vld [vmem:[%s4062_s5 + $0x78] sm:$0xff]  }
0x19bd   :  { %3182 = vmatprep.subr.bf16.mxu0 %v3400_v1 }
0x19be   :  { %v3363_v11 = vpop.eup %3362  ;;  %v2336_v55 = vsel %vm117_vm2, %v3839_v22, %v3253_v38  ;;  %v2335_v56 = vsel %vm117_vm2, %v3837_v17, %v3252_v6  ;;  %v2793_v17 = vld [vmem:[%s4063_s6 + $0xa] ss:$0 sm:$0xff]  ;;  %v2803_v38 = vld [vmem:[%s4063_s6 + $0x9] ss:$0 sm:$0xff] }
0x19bf   :  { %v2212_v7 = vmul.f32 %v3363_v11, %v3359_v32  ;;  %v2337_v0 = vsel %vm1022_vm4, %v2335_v56, %v3257_v59  ;;  %v2338_v3 = vsel %vm1022_vm4, %v2336_v55, %v3258_v57  ;;  %v3283_v32 = vld [vmem:[%s4061_s4 + $0x18] sm:$0xff]  }
0x19c0   :  { %3183 = vmatpush3.bf16.msra.mxu0 %v3281_v44  ;;  %v2797_v44 = vld [vmem:[%s4063_s6 + $0xc] ss:$0 sm:$0xff] }
0x19c1   :  { %v2214_v14 = vpack.c.bf16 %v2212_v7, %v2212_v7  ;;  %3196 = vmatprep.subr.bf16.mxu0 %v3400_v1 }
0x19c3   :  { %3177 = vmatmul.mubr.msk.bf16.vlgmr.msra.gmra.mrb[72].mxu1 %vm117_vm2, %v2214_v14 }
0x19c4   :  { %3192 = vmatprep.mubr.msk.bf16.mxu1 %vm3401_vm0, %v3400_v1 }
0x1a8e   :  { %v2257_v45 = vpop.f32.mrb[68].mxu0 }
0x1a8f   :  { %v3172_v46 = vpop.f32.mrb[69].mxu0 }
0x1a90   :  { %v2260_v47 = vpop.f32.mrb[70].mxu0 }
0x1a91   :  { %v3173_v48 = vpop.f32.mrb[71].mxu0 }
0x1a92   :  { %v2798_v48 = vld [vmem:[%s4063_s6 + $0xd] ss:$0 sm:$0xff] }
0x1a96   :  { %v2305_v49 = vpop.f32.mrb[72].mxu1 }
0x1a97   :  { %v3259_v50 = vpack.i.bf16 %v2305_v49, %v2257_v45  ;;  %v3178_v51 = vpop.f32.mrb[73].mxu1 }
0x1a98   :  { %v2308_v52 = vpop.f32.mrb[74].mxu1 }
0x1a99   :  { %3260 = vrot.lane.b32.xlu1 %v3259_v50, %s3415_s30  ;;  %v3179_v2 = vpop.f32.mrb[75].mxu1 }
0x1a9a   :  { %v3290_v2 = vld [vmem:[%s4062_s5 + $0x70] sm:$0xff]  }
0x1b0b   :  { %v3261_v61 = vpop.permute.xlu1 %3260 }
0x1b0c   :  { %v3263_v62 = vunpack.i.h.bf16 %v3261_v61  ;;  %v3262_v63 = vunpack.i.l.bf16 %v3261_v61 }
0x1b0e   :  { %v2340_v4 = vsel %vm1025_vm5, %v2338_v3, %v3263_v62  ;;  %v2339_v5 = vsel %vm1025_vm5, %v2337_v0, %v3262_v63 }
0x1b0f   :  { %v2341_v9 = vpack.c.bf16 %v2340_v4, %v2339_v5 }
0x1b11   :  { %3185 = vmatmul.mubr.msk.bf16.vlgmr.msra.gmra.mrb[72].mxu0 %vm63_vm1, %v2341_v9 }
0x1b12   :  { %3212 = vmatprep.mubr.msk.bf16.mxu0 %vm3401_vm0, %v3400_v1  ;;  %3197 = vmatpush3.bf16.msra.mxu0 %v3284_v33 }
0x1b13   :  { %3198 = vmatprep.subr.bf16.mxu0 %v3400_v1 }
0x1b16   :  { %3199 = vmatpush3.bf16.msra.mxu0 %v3285_v35 }
0x1b17   :  { %3200 = vmatprep.subr.bf16.mxu0 %v3400_v1 }
0x1b1a   :  { %3201 = vmatpush3.bf16.msra.mxu0 %v3286_v36  ;;  %v2833_v36 = vld [vmem:[%s4063_s6 + $0xf] ss:$0 sm:$0xff] }
0x1b1b   :  { %3202 = vmatprep.subr.bf16.mxu0 %v3400_v1 }
0x1b1e   :  { %3203 = vmatpush3.bf16.msra.mxu0 %v3287_v37 }
0x1b1f   :  { %3204 = vmatprep.subr.bf16.mxu0 %v3400_v1 }
0x1b22   :  { %3205 = vmatpush3.bf16.msra.mxu0 %v3288_v23 }
0x1b23   :  { %3206 = vmatprep.subr.bf16.mxu0 %v3400_v1 }
0x1b26   :  { %3207 = vmatpush3.bf16.msra.mxu0 %v3289_v31 }
0x1b27   :  { %3208 = vmatprep.subr.bf16.mxu0 %v3400_v1 }
0x1b2a   :  { %3209 = vmatpush3.bf16.msra.mxu0 %v3290_v2 }
0x1b2b   :  { %3210 = vmatprep.subr.bf16.mxu0 %v3400_v1 }
0x1b2e   :  { %3211 = vmatpush3.bf16.msra.mxu0 %v3291_v41 }
0x1be4   :  { %v2400_v22 = vpop.f32.mrb[72].mxu0 }
0x1be5   :  { %v2401_v10 = vadd.f32 %v2793_v17, %v2400_v22  ;;  %v3186_v12 = vpop.f32.mrb[73].mxu0 }
0x1be6   :  { %v2403_v13 = vpop.f32.mrb[74].mxu0 }
0x1be7   :  { %v2404_v15 = vadd.f32 %v2793_v17, %v2403_v13  ;;  %v3187_v8 = vpop.f32.mrb[75].mxu0  ;;  %v2407_v54 = vadd.f32 %v2401_v10, %v3765_v24 }
0x1be9   :  { %v2408_v58 = vadd.f32 %v2404_v15, %v3767_v25  ;;  %v2409_v60 = vsel %vm63_vm1, %v2407_v54, 0.0  ;;  %v3282_v25 = vld [vmem:[%s4061_s4 + $0x10] sm:$0xff]   ;;  %s3376_s4 = scalar_lea.vmem %s2714_s26, 256 }
0x1bea   :  { %2410 = vadd.xlane.f32.xlu0 %v2409_v60  ;;  %3189 = vmatpush3.bf16.msra.mxu1 %v3282_v25  ;;  %p3377_p0 = scmp.ne.s32.totalorder %s2714_s26, %s3376_s4  ;;  %p3382_p2 = scmp.lt.s32.totalorder %s3376_s4, %s3376_s4 }
0x1beb   :  { %v2412_v16 = vsel %vm63_vm1, %v2408_v58, 0.0  ;;  %3190 = vmatprep.subr.bf16.mxu1 %v3400_v1  ;;  %v2823_v1 = vld [vmem:[%s4063_s6 + $0xb] ss:$0 sm:$0xff] }
0x1bec   :  { %2413 = vadd.xlane.f32.xlu1 %v2412_v16  ;;  %p3383_p3 = por %p3382_p2, %p3381_p1 }
0x1bee   :  { %3191 = vmatpush3.bf16.msra.mxu1 %v3283_v32  ;;  %v2832_v32 = vld [vmem:[%s4063_s6 + $0xe] ss:$0 sm:$0xff]  ;;  %p3384_p4 = pnand %p3383_p3, %p3377_p0 }
0x1c77   :  { %v2411_v19 = vpop.xlane.xlu0 %2410 }
0x1c78   :  { %v2415_v20 = vmul.f32 0.03125, %v2411_v19 }
0x1c79   :  { %v2414_v21 = vpop.xlane.xlu1 %2413 }
0x1c7a   :  { %v2417_v18 = vsub.f32 %v2407_v54, %v2415_v20  ;;  %v2416_v27 = vmul.f32 0.03125, %v2414_v21 }
0x1c7c   :  { %v2418_v28 = vsub.f32 %v2408_v58, %v2416_v27  ;;  %v2419_v26 = vmul.f32 %v2417_v18, %v2417_v18 }
0x1c7e   :  { %v2421_v29 = vsel %vm63_vm1, %v2419_v26, 0.0  ;;  %v2420_v30 = vmul.f32 %v2418_v28, %v2418_v28 }
0x1c7f   :  { %2422 = vadd.xlane.f32.xlu0 %v2421_v29 }
0x1c80   :  { %v2424_v24 = vsel %vm63_vm1, %v2420_v30, 0.0 }
0x1c83   :  { %2425 = vadd.xlane.f32.xlu0 %v2424_v24 }
0x1d0c   :  { %v2423_v39 = vpop.xlane.xlu0 %2422 }
0x1d0d   :  { %v2427_v34 = vmul.f32 0.03125, %v2423_v39 }
0x1d0f   :  { %v2429_v40 = vadd.f32 1e-05, %v2427_v34 }
0x1d10   :  { %v2426_v42 = vpop.xlane.xlu0 %2425 }
0x1d11   :  { %3364 = vrsqrt.f32 %v2429_v40  ;;  %v2428_v11 = vmul.f32 0.03125, %v2426_v42 }
0x1d13   :  { %v2430_v7 = vadd.f32 1e-05, %v2428_v11 }
0x1d15   :  { %3366 = vrsqrt.f32 %v2430_v7 }
0x1d1b   :  { %v3365_v14 = vpop.eup %3364 }
0x1d1c   :  { %v2433_v43 = vmul.f32 %v3365_v14, %v2417_v18 }
0x1d1e   :  { %v2439_v46 = vmul.f32 %v2797_v44, %v2433_v43 }
0x1d1f   :  { %v3367_v45 = vpop.eup %3366 }
0x1d20   :  { %v2434_v47 = vmul.f32 %v3367_v45, %v2418_v28  ;;  %v2445_v50 = vadd.f32 %v2798_v48, %v2439_v46 }
0x1d22   :  { %v2440_v49 = vmul.f32 %v2797_v44, %v2434_v47 }
0x1d24   :  { %v2446_v51 = vadd.f32 %v2798_v48, %v2440_v49 }
0x1d26   :  { %v2447_v52 = vpack.c.bf16 %v2446_v51, %v2445_v50 }
0x1d28   :  { %3193 = vmatmul.mubr.msk.bf16.vlgmr.msra.gmra.mrb[76].mxu1 %vm63_vm1, %v2447_v52 }
0x1dfb   :  { %v2506_v6 = vpop.f32.mrb[76].mxu1 }
0x1dfc   :  { %v2507_v53 = vadd.f32 %v2803_v38, %v2506_v6  ;;  %v3194_v55 = vpop.f32.mrb[77].mxu1 }
0x1dfd   :  { %v2509_v56 = vpop.f32.mrb[78].mxu1 }
0x1dfe   :  { %v2510_v57 = vadd.f32 %v2803_v38, %v2509_v56  ;;  %v3195_v59 = vpop.f32.mrb[79].mxu1  ;;  %v2513_v61 = vmax.f32 %v2507_v53, 0.0  ;;  %v2834_v53 = vld [vmem:[%s4063_s6 + $0x10] ss:$0 sm:$0xff] }
0x1e00   :  { %v2514_v62 = vmax.f32 %v2510_v57, 0.0  ;;  %v2835_v57 = vld [vmem:[%s4063_s6 + $0x11] ss:$0 sm:$0xff] }
0x1e02   :  { %v2515_v63 = vpack.c.bf16 %v2514_v62, %v2513_v61 }
0x1e04   :  { %3213 = vmatmul.mubr.bf16.vlgmr.msra.gmra.mrb[76].mxu0 %v2515_v63 }
0x1ed7   :  { %v2619_v0 = vpop.f32.mrb[76].mxu0 }
0x1ed8   :  { %v2620_v3 = vadd.f32 %v2823_v1, %v2619_v0  ;;  %v3214_v4 = vpop.f32.mrb[77].mxu0 }
0x1ed9   :  { %v2622_v5 = vpop.f32.mrb[78].mxu0 }
0x1eda   :  { %v2626_v9 = vadd.f32 %v2620_v3, %v2445_v50  ;;  %v2623_v17 = vadd.f32 %v2823_v1, %v2622_v5  ;;  %v3215_v22 = vpop.f32.mrb[79].mxu0 }
0x1edc   :  { %v2628_v10 = vsel %vm63_vm1, %v2626_v9, 0.0  ;;  %v2627_v12 = vadd.f32 %v2623_v17, %v2446_v51 }
0x1edd   :  { %2629 = vadd.xlane.f32.xlu1 %v2628_v10 }
0x1ede   :  { %v2631_v13 = vsel %vm63_vm1, %v2627_v12, 0.0 }
0x1edf   :  { %2632 = vadd.xlane.f32.xlu0 %v2631_v13 }
0x1f6a   :  { %v2630_v15 = vpop.xlane.xlu1 %2629 }
0x1f6b   :  { %v2634_v8 = vmul.f32 0.03125, %v2630_v15 }
0x1f6c   :  { %v2633_v54 = vpop.xlane.xlu0 %2632 }
0x1f6d   :  { %v2636_v58 = vsub.f32 %v2626_v9, %v2634_v8  ;;  %v2635_v60 = vmul.f32 0.03125, %v2633_v54 }
0x1f6f   :  { %v2637_v16 = vsub.f32 %v2627_v12, %v2635_v60  ;;  %v2638_v19 = vmul.f32 %v2636_v58, %v2636_v58 }
0x1f71   :  { %v2640_v20 = vsel %vm63_vm1, %v2638_v19, 0.0  ;;  %v2639_v21 = vmul.f32 %v2637_v16, %v2637_v16 }
0x1f72   :  { %2641 = vadd.xlane.f32.xlu1 %v2640_v20 }
0x1f73   :  { %v2643_v18 = vsel %vm63_vm1, %v2639_v21, 0.0 }
0x1f74   :  { %2644 = vadd.xlane.f32.xlu0 %v2643_v18 }
0x1fff   :  { %v2642_v27 = vpop.xlane.xlu1 %2641 }
0x2000   :  { %v2646_v28 = vmul.f32 0.03125, %v2642_v27 }
0x2001   :  { %v2645_v26 = vpop.xlane.xlu0 %2644 }
0x2002   :  { %v2648_v29 = vadd.f32 1e-05, %v2646_v28  ;;  %v2647_v30 = vmul.f32 0.03125, %v2645_v26 }
0x2004   :  { %3368 = vrsqrt.f32 %v2648_v29  ;;  %v2649_v24 = vadd.f32 1e-05, %v2647_v30 }
0x2006   :  { %3370 = vrsqrt.f32 %v2649_v24 }
0x200e   :  { %v3369_v25 = vpop.eup %3368 }
0x200f   :  { %v2652_v33 = vmul.f32 %v3369_v25, %v2636_v58 }
0x2010   :  { %v3371_v35 = vpop.eup %3370 }
0x2011   :  { %v2658_v37 = vmul.f32 %v2832_v32, %v2652_v33  ;;  %v2653_v23 = vmul.f32 %v3371_v35, %v2637_v16 }
0x2013   :  { %v2664_v31 = vadd.f32 %v2833_v36, %v2658_v37  ;;  %v2659_v39 = vmul.f32 %v2832_v32, %v2653_v23 }
0x2015   :  { %v2668_v34 = vsel %vm63_vm1, %v2664_v31, 0.0  ;;  %v2665_v40 = vadd.f32 %v2833_v36, %v2659_v39 }
0x2016   :  { %2669 = vadd.xlane.f32.xlu1 %v2668_v34 }
0x2017   :  { %v2671_v42 = vsel %vm63_vm1, %v2665_v40, 0.0 }
0x2018   :  { %2672 = vadd.xlane.f32.xlu0 %v2671_v42 }
0x20a3   :  { %v2670_v11 = vpop.xlane.xlu1 %2669 }
0x20a4   :  { %v2674_v7 = vmul.f32 0.03125, %v2670_v11 }
0x20a5   :  { %v2673_v14 = vpop.xlane.xlu0 %2672 }
0x20a6   :  { %v2676_v43 = vsub.f32 %v2664_v31, %v2674_v7  ;;  %v2675_v44 = vmul.f32 0.03125, %v2673_v14 }
0x20a8   :  { %v2677_v45 = vsub.f32 %v2665_v40, %v2675_v44  ;;  %v2678_v46 = vmul.f32 %v2676_v43, %v2676_v43 }
0x20aa   :  { %v2680_v47 = vsel %vm63_vm1, %v2678_v46, 0.0  ;;  %v2679_v48 = vmul.f32 %v2677_v45, %v2677_v45 }
0x20ab   :  { %2681 = vadd.xlane.f32.xlu1 %v2680_v47 }
0x20ac   :  { %v2683_v49 = vsel %vm63_vm1, %v2679_v48, 0.0 }
0x20ad   :  { %2684 = vadd.xlane.f32.xlu0 %v2683_v49 }
0x2138   :  { %v2682_v50 = vpop.xlane.xlu1 %2681 }
0x2139   :  { %v2686_v51 = vmul.f32 0.03125, %v2682_v50 }
0x213a   :  { %v2685_v52 = vpop.xlane.xlu0 %2684 }
0x213b   :  { %v2688_v2 = vadd.f32 1e-05, %v2686_v51  ;;  %v2687_v41 = vmul.f32 0.03125, %v2685_v52 }
0x213d   :  { %3372 = vrsqrt.f32 %v2688_v2  ;;  %v2689_v38 = vadd.f32 1e-05, %v2687_v41 }
0x213f   :  { %3374 = vrsqrt.f32 %v2689_v38 }
0x2147   :  { %v3373_v6 = vpop.eup %3372 }
0x2148   :  { %v2692_v55 = vmul.f32 %v3373_v6, %v2676_v43 }
0x2149   :  { %v3375_v56 = vpop.eup %3374 }
0x214a   :  { %v2693_v59 = vmul.f32 %v3375_v56, %v2677_v45  ;;  %v2698_v61 = vmul.f32 %v2834_v53, %v2692_v55 }
0x214c   :  { %v2699_v62 = vmul.f32 %v2834_v53, %v2693_v59  ;;  %v2704_v63 = vadd.f32 %v2835_v57, %v2698_v61 }
0x214e   :  { %v2705_v1 = vadd.f32 %v2835_v57, %v2699_v62  ;;  %2706 = vst.msk [vmem:[#allocation2] sm:$0xff] %vm63_vm1, %v2704_v63 }
0x2150   :  { %2707 = vst.msk [vmem:[#allocation2 + $0x8] sm:$0xff] %vm63_vm1, %v2705_v1 }
0x2151   :  { %3387 = shalt.err (!%p3384_p4)
}
0x2152   :  { %s3388_s28 = scalar_lea.hbm %s4064_s7, 256 }
0x2153   :  { %p3389_p5 = scmp.ne.s32.totalorder %s4064_s7, %s3388_s28  ;;  %p3392_p6 = scmp.lt.u32.totalorder %s3388_s28, %s4064_s7 }
0x2155   :  { %p3394_p7 = pnand %p3392_p6, %p3389_p5 }
0x2157   :  { %3397 = shalt.err (!%p3394_p7)
}
0x2158   :  { %s3417_s2 = smov 128  }
0x2159   :  { %2719 = dma.vmem_to_hbm [thread:$0]  %s2714_s26, 256, %s4064_s7, [#allocation3], %s3417_s2, %s3417_s2, %s3413_s24  }
0x215a   :  { %3398 = dma.done.wait [#allocation3], 256  }
0x215b   :  { %3399 = vsyncadd [#allocation3], 4294967040 }
0x215c   :  { %2723 = vsyncpa [#allocation3], 1 }

</bundles_post_ra>
